<compile_context>
chip_gen: v7x
topology: tpu7x:2x2x1
jax: 0.10.0
libtpu: 0.0.40
codegen_flags: <defaults>
</compile_context>

<pallas_src>
import math

import jax
import jax.numpy as jnp
from jax.experimental import pallas as pl
from jax.experimental.pallas import tpu as pltpu

# ----------------------------- config -----------------------------
SRC_VOCAB = 50
EMBED = 32
NUM_LAYERS = 2
HEADS = 4
HEAD_DIM = EMBED // HEADS
FWD_EXP = 4
HIDDEN = FWD_EXP * EMBED
MAX_LEN = 16
BATCH = 2
SEQ = 8
EPS = 1e-5
QKV_PAD = 128  # pad fused QKV output width to a full 128-lane MXU pass


# ------------------------ Pallas kernel body ------------------------
def _layernorm(z, g, b):
    mu = jnp.mean(z, axis=-1, keepdims=True)
    var = jnp.mean(jnp.square(z - mu), axis=-1, keepdims=True)
    return (z - mu) * jax.lax.rsqrt(var + EPS) * g + b


def encoder_kernel(
    tok_ref, pos_ref, bias_ref,
    wqkv_ref, wfc_ref, bfc_ref,
    g1_ref, b1_ref, g2_ref, b2_ref,
    w1_ref, bb1_ref, w2_ref, bb2_ref,
    out_ref,
):
    # Embedding add folded in: x rows are (batch, seq) row-major, shape (N*S, E)
    pos = pos_ref[...]                                        # (S, E)
    x = tok_ref[...] + jnp.concatenate([pos] * BATCH, axis=0)  # (N*S, E)

    inv_scale = jnp.float32(1.0 / math.sqrt(EMBED))

    for l in range(NUM_LAYERS):                # static unroll, NUM_LAYERS = 2
        # ---- fused QKV projection: one lane-dense matmul ----
        qkv = jnp.dot(x, wqkv_ref[l], preferred_element_type=jnp.float32)  # (N*S, 128)
        q = qkv[:, 0 * EMBED:1 * EMBED]
        k = qkv[:, 1 * EMBED:2 * EMBED]
        v = qkv[:, 2 * EMBED:3 * EMBED]

        # ---- attention (per batch element, static loop) ----
        ctx_list = []
        for b in range(BATCH):
            lo, hi = b * SEQ, (b + 1) * SEQ
            qb = q[lo:hi].reshape(SEQ, HEADS, HEAD_DIM)
            kb = k[lo:hi].reshape(SEQ, HEADS, HEAD_DIM)
            vb = v[lo:hi].reshape(SEQ, HEADS, HEAD_DIM)

            energy = jnp.einsum('qhd,khd->hqk', qb, kb,
                                preferred_element_type=jnp.float32)  # (H, S, S)
            # masked_fill(mask==0, -1e20) + 1/sqrt(E) scale (additive bias form)
            energy = energy * inv_scale + bias_ref[b][None, None, :]
            energy = energy - jnp.max(energy, axis=-1, keepdims=True)
            p = jnp.exp(energy)
            denom = jnp.sum(p, axis=-1, keepdims=True)
            attn = p * pl.reciprocal(denom, approx=False)            # EUP path

            ctx = jnp.einsum('hqk,khd->qhd', attn, vb,
                             preferred_element_type=jnp.float32).reshape(SEQ, EMBED)
            ctx_list.append(ctx)
        ctx_all = jnp.concatenate(ctx_list, axis=0)                  # (N*S, E)

        # ---- fc_out + residual + LayerNorm 1 (dropout = identity, eval) ----
        attn_out = jnp.dot(ctx_all, wfc_ref[l],
                           preferred_element_type=jnp.float32) + bfc_ref[l]
        h1 = _layernorm(attn_out + x, g1_ref[l], b1_ref[l])

        # ---- feed-forward: Linear -> ReLU -> Linear ----
        ff = jnp.dot(h1, w1_ref[l], preferred_element_type=jnp.float32) + bb1_ref[l]
        ff = jnp.maximum(ff, 0.0)
        ff = jnp.dot(ff, w2_ref[l], preferred_element_type=jnp.float32) + bb2_ref[l]

        # ---- residual + LayerNorm 2 (dropout = identity, eval) ----
        x = _layernorm(ff + h1, g2_ref[l], b2_ref[l])

    out_ref[...] = x


# -------------------- host-side weight preparation --------------------
def _block_diag_heads(w):
    """w: (D, D) PyTorch (out, in) layout. Returns (E, E) so that
    x(S, E) @ result applies w.T per head (same as per-head nn.Linear)."""
    wt = w.T                                   # (in=D, out=D)
    eye = jnp.eye(HEADS, dtype=w.dtype)
    return jnp.einsum('ij,ab->iajb', eye, wt).reshape(EMBED, EMBED)


def prepare_weights(layer_params):
    wqkv, wfc_t, bfc, g1, b1, g2, b2, w1_t, bb1, w2_t, bb2 = ([] for _ in range(11))
    for p in layer_params:
        qkv = jnp.concatenate([_block_diag_heads(p['wq']),
                               _block_diag_heads(p['wk']),
                               _block_diag_heads(p['wv'])], axis=1)   # (E, 3E)
        qkv = jnp.pad(qkv, ((0, 0), (0, QKV_PAD - 3 * EMBED)))        # (E, 128)
        wqkv.append(qkv)
        wfc_t.append(p['wfc'].T)                                      # (E, E)
        bfc.append(p['bfc'][None, :])                                 # (1, E)
        g1.append(p['g1'][None, :]); b1.append(p['b1'][None, :])
        g2.append(p['g2'][None, :]); b2.append(p['b2'][None, :])
        w1_t.append(p['w1'].T); bb1.append(p['bb1'][None, :])         # (E,H),(1,H)
        w2_t.append(p['w2'].T); bb2.append(p['bb2'][None, :])         # (H,E),(1,E)
    st = lambda xs: jnp.stack(xs, axis=0)
    return dict(wqkv=st(wqkv), wfc_t=st(wfc_t), bfc=st(bfc),
                g1=st(g1), b1=st(b1), g2=st(g2), b2=st(b2),
                w1_t=st(w1_t), bb1=st(bb1), w2_t=st(w2_t), bb2=st(bb2))


def _spec(shape):
    nd = len(shape)
    return pl.BlockSpec(shape, lambda i, _nd=nd: (0,) * _nd)


# --------------------------- Encoder ---------------------------
def encoder_forward(tokens, mask, word_emb, pos_emb, layer_params):
    N, S = tokens.shape
    positions = jnp.arange(S, dtype=jnp.int32)

    # Embedding gathers are glue (plain JAX); dropout is identity (eval).
    tok = jnp.take(word_emb, tokens.reshape(-1), axis=0).astype(jnp.float32)  # (N*S, E)
    pos = jnp.take(pos_emb, positions, axis=0).astype(jnp.float32)            # (S, E)
    # Mask as additive bias (matches masked_fill(mask==0, -1e20) semantics).
    mask_bias = jnp.where(mask[:, 0, :] == 0,
                          jnp.float32(-1e20), jnp.float32(0.0))               # (N, S)

    w = prepare_weights(layer_params)
    inputs = [tok, pos, mask_bias,
              w['wqkv'], w['wfc_t'], w['bfc'],
              w['g1'], w['b1'], w['g2'], w['b2'],
              w['w1_t'], w['bb1'], w['w2_t'], w['bb2']]

    out = pl.pallas_call(
        encoder_kernel,
        out_shape=jax.ShapeDtypeStruct((N * S, EMBED), jnp.float32),
        grid=(1,),
        in_specs=[_spec(a.shape) for a in inputs],
        out_specs=_spec((N * S, EMBED)),
        compiler_params=pltpu.CompilerParams(
            dimension_semantics=("arbitrary",)),
    )(*inputs)
    # TODO(synk): output last dim is 32 (< 128 lanes) -> masked store; a single
    # (16,32) slab written once, negligible at this size.
    return out.reshape(N, S, EMBED)


# ------------------- pure-JAX reference (for checking) -------------------
def _ref_block(x, mask, p):
    N, S, E = x.shape
    xh = x.reshape(N, S, HEADS, HEAD_DIM)
    q = jnp.einsum('nshd,od->nsho', xh, p['wq'])
    k = jnp.einsum('nshd,od->nsho', xh, p['wk'])
    v = jnp.einsum('nshd,od->nsho', xh, p['wv'])
    energy = jnp.einsum('nqhd,nkhd->nhqk', q, k)
    energy = jnp.where(mask[:, None, :, :] == 0, -1e20, energy)
    attn = jax.nn.softmax(energy / math.sqrt(EMBED), axis=3)
    ctx = jnp.einsum('nhqk,nkhd->nqhd', attn, v).reshape(N, S, E)
    attn_out = ctx @ p['wfc'].T + p['bfc']

    def ln(z, g, b):
        mu = jnp.mean(z, -1, keepdims=True)
        var = jnp.mean((z - mu) ** 2, -1, keepdims=True)
        return (z - mu) / jnp.sqrt(var + EPS) * g + b

    h1 = ln(attn_out + x, p['g1'], p['b1'])
    ff = jnp.maximum(h1 @ p['w1'].T + p['bb1'], 0) @ p['w2'].T + p['bb2']
    return ln(ff + h1, p['g2'], p['b2'])


def _ref_encoder(tokens, mask, word_emb, pos_emb, layer_params):
    N, S = tokens.shape
    out = jnp.take(word_emb, tokens, axis=0) + pos_emb[None, :S]
    for p in layer_params:
        out = _ref_block(out, mask, p)
    return out


# --------------------------- params ---------------------------
def init_params(key):
    keys = jax.random.split(key, 4 + NUM_LAYERS)
    word_emb = 0.02 * jax.random.normal(keys[0], (SRC_VOCAB, EMBED), jnp.float32)
    pos_emb = 0.02 * jax.random.normal(keys[1], (MAX_LEN, EMBED), jnp.float32)
    layers = []
    for i in range(NUM_LAYERS):
        ks = jax.random.split(keys[4 + i], 12)
        layers.append(dict(
            wq=0.1 * jax.random.normal(ks[0], (HEAD_DIM, HEAD_DIM), jnp.float32),
            wk=0.1 * jax.random.normal(ks[1], (HEAD_DIM, HEAD_DIM), jnp.float32),
            wv=0.1 * jax.random.normal(ks[2], (HEAD_DIM, HEAD_DIM), jnp.float32),
            wfc=0.1 * jax.random.normal(ks[3], (EMBED, EMBED), jnp.float32),
            bfc=0.01 * jax.random.normal(ks[4], (EMBED,), jnp.float32),
            g1=1.0 + 0.1 * jax.random.normal(ks[5], (EMBED,), jnp.float32),
            b1=0.01 * jax.random.normal(ks[6], (EMBED,), jnp.float32),
            g2=1.0 + 0.1 * jax.random.normal(ks[7], (EMBED,), jnp.float32),
            b2=0.01 * jax.random.normal(ks[8], (EMBED,), jnp.float32),
            w1=0.1 * jax.random.normal(ks[9], (HIDDEN, EMBED), jnp.float32),
            bb1=0.01 * jax.random.normal(ks[10], (HIDDEN,), jnp.float32),
            w2=0.1 * jax.random.normal(ks[11], (EMBED, HIDDEN), jnp.float32),
            bb2=jnp.zeros((EMBED,), jnp.float32),
        ))
    return word_emb, pos_emb, layers


if __name__ == "__main__":
    key = jax.random.PRNGKey(0)
    k_tok, k_param = jax.random.split(key)

    tokens = jax.random.randint(k_tok, (BATCH, SEQ), 0, SRC_VOCAB, dtype=jnp.int32)
    # src mask: all positions valid except last key position of batch 1
    mask = jnp.ones((BATCH, 1, SEQ), jnp.int32).at[1, 0, SEQ - 1].set(0)

    word_emb, pos_emb, layer_params = init_params(k_param)

    out = encoder_forward(tokens, mask, word_emb, pos_emb, layer_params)
    out = jax.block_until_ready(out)

    ref = _ref_encoder(tokens, mask, word_emb, pos_emb, layer_params)
    assert out.shape == (BATCH, SEQ, EMBED)
    assert jnp.allclose(out, ref, atol=1e-4, rtol=1e-4), "mismatch vs reference"

    print("KERNEL_OK")
</pallas_src>

<mosaic_0001>
module attributes {stable_mosaic.version = 11 : i64} {
  func.func @encoder_kernel(%arg0: i32, %arg1: memref<16x32xf32, #tpu.memory_space<vmem>>, %arg2: memref<8x32xf32, #tpu.memory_space<vmem>>, %arg3: memref<2x8xf32, #tpu.memory_space<vmem>>, %arg4: memref<2x32x128xf32, #tpu.memory_space<vmem>>, %arg5: memref<2x32x32xf32, #tpu.memory_space<vmem>>, %arg6: memref<2x1x32xf32, #tpu.memory_space<vmem>>, %arg7: memref<2x1x32xf32, #tpu.memory_space<vmem>>, %arg8: memref<2x1x32xf32, #tpu.memory_space<vmem>>, %arg9: memref<2x1x32xf32, #tpu.memory_space<vmem>>, %arg10: memref<2x1x32xf32, #tpu.memory_space<vmem>>, %arg11: memref<2x32x128xf32, #tpu.memory_space<vmem>>, %arg12: memref<2x1x128xf32, #tpu.memory_space<vmem>>, %arg13: memref<2x128x32xf32, #tpu.memory_space<vmem>>, %arg14: memref<2x1x32xf32, #tpu.memory_space<vmem>>, %arg15: memref<16x32xf32, #tpu.memory_space<vmem>>) attributes {dimension_semantics = [#tpu.dimension_semantics<arbitrary>], iteration_bounds = array<i64: 1>, scalar_prefetch = 0 : i64, scratch_operands = 0 : i64, tpu.core_type = #tpu.core_type<tc>, window_params = [{pipeline_mode = #tpu.pipeline_mode<synchronous>, transform_indices = @transform_0, window_bounds = array<i64: 16, 32>}, {pipeline_mode = #tpu.pipeline_mode<synchronous>, transform_indices = @transform_1, window_bounds = array<i64: 8, 32>}, {pipeline_mode = #tpu.pipeline_mode<synchronous>, transform_indices = @transform_2, window_bounds = array<i64: 2, 8>}, {pipeline_mode = #tpu.pipeline_mode<synchronous>, transform_indices = @transform_3, window_bounds = array<i64: 2, 32, 128>}, {pipeline_mode = #tpu.pipeline_mode<synchronous>, transform_indices = @transform_4, window_bounds = array<i64: 2, 32, 32>}, {pipeline_mode = #tpu.pipeline_mode<synchronous>, transform_indices = @transform_5, window_bounds = array<i64: 2, 1, 32>}, {pipeline_mode = #tpu.pipeline_mode<synchronous>, transform_indices = @transform_6, window_bounds = array<i64: 2, 1, 32>}, {pipeline_mode = #tpu.pipeline_mode<synchronous>, transform_indices = @transform_7, window_bounds = array<i64: 2, 1, 32>}, {pipeline_mode = #tpu.pipeline_mode<synchronous>, transform_indices = @transform_8, window_bounds = array<i64: 2, 1, 32>}, {pipeline_mode = #tpu.pipeline_mode<synchronous>, transform_indices = @transform_9, window_bounds = array<i64: 2, 1, 32>}, {pipeline_mode = #tpu.pipeline_mode<synchronous>, transform_indices = @transform_10, window_bounds = array<i64: 2, 32, 128>}, {pipeline_mode = #tpu.pipeline_mode<synchronous>, transform_indices = @transform_11, window_bounds = array<i64: 2, 1, 128>}, {pipeline_mode = #tpu.pipeline_mode<synchronous>, transform_indices = @transform_12, window_bounds = array<i64: 2, 128, 32>}, {pipeline_mode = #tpu.pipeline_mode<synchronous>, transform_indices = @transform_13, window_bounds = array<i64: 2, 1, 32>}, {pipeline_mode = #tpu.pipeline_mode<synchronous>, transform_indices = @transform_14, window_bounds = array<i64: 16, 32>}]} {
    %c0 = arith.constant 0 : index
    %c0_0 = arith.constant 0 : index
    %0 = vector.load %arg2[%c0, %c0_0] : memref<8x32xf32, #tpu.memory_space<vmem>>, vector<8x32xf32>
    %c0_1 = arith.constant 0 : index
    %c0_2 = arith.constant 0 : index
    %1 = vector.load %arg1[%c0_1, %c0_2] : memref<16x32xf32, #tpu.memory_space<vmem>>, vector<16x32xf32>
    %2 = tpu.concatenate %0, %0 in 0 : vector<8x32xf32>, vector<8x32xf32> -> vector<16x32xf32>
    %3 = arith.addf %1, %2 : vector<16x32xf32>
    %c0_3 = arith.constant 0 : index
    %c0_4 = arith.constant 0 : index
    %c0_5 = arith.constant 0 : index
    %4 = vector.load %arg4[%c0_3, %c0_4, %c0_5] : memref<2x32x128xf32, #tpu.memory_space<vmem>>, vector<1x32x128xf32>
    %5 = vector.shape_cast %4 : vector<1x32x128xf32> to vector<32x128xf32>
    %cst = arith.constant dense<0.000000e+00> : vector<16x128xf32>
    %6 = tpu.matmul %3, %5, %cst {dimension_numbers = #tpu.dot_dimension_numbers<[1], [0], [0], [1], [0, 0, 1, 1], [], []>} : vector<16x32xf32>, vector<32x128xf32>, vector<16x128xf32> -> vector<16x128xf32>
    %7 = vector.extract_strided_slice %6 {offsets = [0, 0], sizes = [16, 32], strides = [1, 1]} : vector<16x128xf32> to vector<16x32xf32>
    %8 = vector.extract_strided_slice %6 {offsets = [0, 32], sizes = [16, 32], strides = [1, 1]} : vector<16x128xf32> to vector<16x32xf32>
    %9 = vector.extract_strided_slice %6 {offsets = [0, 64], sizes = [16, 32], strides = [1, 1]} : vector<16x128xf32> to vector<16x32xf32>
    %10 = vector.extract_strided_slice %7 {offsets = [0, 0], sizes = [8, 32], strides = [1, 1]} : vector<16x32xf32> to vector<8x32xf32>
    %11 = vector.shape_cast %10 : vector<8x32xf32> to vector<8x4x8xf32>
    %12 = vector.extract_strided_slice %8 {offsets = [0, 0], sizes = [8, 32], strides = [1, 1]} : vector<16x32xf32> to vector<8x32xf32>
    %13 = vector.shape_cast %12 : vector<8x32xf32> to vector<8x4x8xf32>
    %14 = vector.extract_strided_slice %9 {offsets = [0, 0], sizes = [8, 32], strides = [1, 1]} : vector<16x32xf32> to vector<8x32xf32>
    %15 = vector.shape_cast %14 : vector<8x32xf32> to vector<8x4x8xf32>
    "tpu.trace_start"() <{level = 10 : i32, message = "qhd,khd->hqk"}> : () -> ()
    %cst_6 = arith.constant dense<0.000000e+00> : vector<4x8x8xf32>
    %16 = tpu.matmul %11, %13, %cst_6 {dimension_numbers = #tpu.dot_dimension_numbers<[2], [2], [0], [0], [0, 1, 0, 0, 1, 0], [1], [1]>} : vector<8x4x8xf32>, vector<8x4x8xf32>, vector<4x8x8xf32> -> vector<4x8x8xf32>
    "tpu.trace_stop"() : () -> ()
    %cst_7 = arith.constant 0.176776692 : f32
    %17 = vector.broadcast %cst_7 : f32 to vector<4x8x8xf32>
    %18 = arith.mulf %16, %17 : vector<4x8x8xf32>
    %c0_8 = arith.constant 0 : index
    %c0_9 = arith.constant 0 : index
    %19 = vector.load %arg3[%c0_8, %c0_9] : memref<2x8xf32, #tpu.memory_space<vmem>>, vector<1x8xf32>
    %20 = vector.shape_cast %19 : vector<1x8xf32> to vector<8xf32>
    %21 = vector.shape_cast %20 : vector<8xf32> to vector<1x1x8xf32>
    %22 = vector.broadcast %21 : vector<1x1x8xf32> to vector<4x8x8xf32>
    %23 = arith.addf %18, %22 : vector<4x8x8xf32>
    %cst_10 = arith.constant dense<0xFF800000> : vector<4x8xf32>
    %24 = vector.multi_reduction <maximumf>, %23, %cst_10 [2] : vector<4x8x8xf32> to vector<4x8xf32>
    %25 = vector.shape_cast %24 : vector<4x8xf32> to vector<4x8x1xf32>
    %26 = vector.broadcast %25 : vector<4x8x1xf32> to vector<4x8x8xf32>
    %27 = arith.subf %23, %26 : vector<4x8x8xf32>
    %28 = math.exp %27 : vector<4x8x8xf32>
    %cst_11 = arith.constant dense<0.000000e+00> : vector<4x8xf32>
    %29 = vector.multi_reduction <add>, %28, %cst_11 [2] : vector<4x8x8xf32> to vector<4x8xf32>
    %30 = vector.shape_cast %29 : vector<4x8xf32> to vector<4x8x1xf32>
    %31 = tpu.reciprocal %30 : vector<4x8x1xf32> -> vector<4x8x1xf32>
    %32 = vector.broadcast %31 : vector<4x8x1xf32> to vector<4x8x8xf32>
    %33 = arith.mulf %28, %32 : vector<4x8x8xf32>
    "tpu.trace_start"() <{level = 10 : i32, message = "hqk,khd->qhd"}> : () -> ()
    %cst_12 = arith.constant dense<0.000000e+00> : vector<4x8x8xf32>
    %34 = tpu.matmul %15, %33, %cst_12 {dimension_numbers = #tpu.dot_dimension_numbers<[0], [2], [2], [1], [0, 1, 0, 2, 1, 1], [1], [0]>} : vector<8x4x8xf32>, vector<4x8x8xf32>, vector<4x8x8xf32> -> vector<4x8x8xf32>
    %35 = tpu.transpose %34, [2, 0, 1] : vector<4x8x8xf32> -> vector<8x4x8xf32>
    "tpu.trace_stop"() : () -> ()
    %36 = vector.shape_cast %35 : vector<8x4x8xf32> to vector<8x32xf32>
    %37 = vector.extract_strided_slice %7 {offsets = [8, 0], sizes = [8, 32], strides = [1, 1]} : vector<16x32xf32> to vector<8x32xf32>
    %38 = vector.shape_cast %37 : vector<8x32xf32> to vector<8x4x8xf32>
    %39 = vector.extract_strided_slice %8 {offsets = [8, 0], sizes = [8, 32], strides = [1, 1]} : vector<16x32xf32> to vector<8x32xf32>
    %40 = vector.shape_cast %39 : vector<8x32xf32> to vector<8x4x8xf32>
    %41 = vector.extract_strided_slice %9 {offsets = [8, 0], sizes = [8, 32], strides = [1, 1]} : vector<16x32xf32> to vector<8x32xf32>
    %42 = vector.shape_cast %41 : vector<8x32xf32> to vector<8x4x8xf32>
    "tpu.trace_start"() <{level = 10 : i32, message = "qhd,khd->hqk"}> : () -> ()
    %cst_13 = arith.constant dense<0.000000e+00> : vector<4x8x8xf32>
    %43 = tpu.matmul %38, %40, %cst_13 {dimension_numbers = #tpu.dot_dimension_numbers<[2], [2], [0], [0], [0, 1, 0, 0, 1, 0], [1], [1]>} : vector<8x4x8xf32>, vector<8x4x8xf32>, vector<4x8x8xf32> -> vector<4x8x8xf32>
    "tpu.trace_stop"() : () -> ()
    %cst_14 = arith.constant 0.176776692 : f32
    %44 = vector.broadcast %cst_14 : f32 to vector<4x8x8xf32>
    %45 = arith.mulf %43, %44 : vector<4x8x8xf32>
    %c1 = arith.constant 1 : index
    %c0_15 = arith.constant 0 : index
    %46 = vector.load %arg3[%c1, %c0_15] : memref<2x8xf32, #tpu.memory_space<vmem>>, vector<1x8xf32>
    %47 = vector.shape_cast %46 : vector<1x8xf32> to vector<8xf32>
    %48 = vector.shape_cast %47 : vector<8xf32> to vector<1x1x8xf32>
    %49 = vector.broadcast %48 : vector<1x1x8xf32> to vector<4x8x8xf32>
    %50 = arith.addf %45, %49 : vector<4x8x8xf32>
    %cst_16 = arith.constant dense<0xFF800000> : vector<4x8xf32>
    %51 = vector.multi_reduction <maximumf>, %50, %cst_16 [2] : vector<4x8x8xf32> to vector<4x8xf32>
    %52 = vector.shape_cast %51 : vector<4x8xf32> to vector<4x8x1xf32>
    %53 = vector.broadcast %52 : vector<4x8x1xf32> to vector<4x8x8xf32>
    %54 = arith.subf %50, %53 : vector<4x8x8xf32>
    %55 = math.exp %54 : vector<4x8x8xf32>
    %cst_17 = arith.constant dense<0.000000e+00> : vector<4x8xf32>
    %56 = vector.multi_reduction <add>, %55, %cst_17 [2] : vector<4x8x8xf32> to vector<4x8xf32>
    %57 = vector.shape_cast %56 : vector<4x8xf32> to vector<4x8x1xf32>
    %58 = tpu.reciprocal %57 : vector<4x8x1xf32> -> vector<4x8x1xf32>
    %59 = vector.broadcast %58 : vector<4x8x1xf32> to vector<4x8x8xf32>
    %60 = arith.mulf %55, %59 : vector<4x8x8xf32>
    "tpu.trace_start"() <{level = 10 : i32, message = "hqk,khd->qhd"}> : () -> ()
    %cst_18 = arith.constant dense<0.000000e+00> : vector<4x8x8xf32>
    %61 = tpu.matmul %42, %60, %cst_18 {dimension_numbers = #tpu.dot_dimension_numbers<[0], [2], [2], [1], [0, 1, 0, 2, 1, 1], [1], [0]>} : vector<8x4x8xf32>, vector<4x8x8xf32>, vector<4x8x8xf32> -> vector<4x8x8xf32>
    %62 = tpu.transpose %61, [2, 0, 1] : vector<4x8x8xf32> -> vector<8x4x8xf32>
    "tpu.trace_stop"() : () -> ()
    %63 = vector.shape_cast %62 : vector<8x4x8xf32> to vector<8x32xf32>
    %64 = tpu.concatenate %36, %63 in 0 : vector<8x32xf32>, vector<8x32xf32> -> vector<16x32xf32>
    %c0_19 = arith.constant 0 : index
    %c0_20 = arith.constant 0 : index
    %c0_21 = arith.constant 0 : index
    %65 = vector.load %arg5[%c0_19, %c0_20, %c0_21] : memref<2x32x32xf32, #tpu.memory_space<vmem>>, vector<1x32x32xf32>
    %66 = vector.shape_cast %65 : vector<1x32x32xf32> to vector<32x32xf32>
    %cst_22 = arith.constant dense<0.000000e+00> : vector<16x32xf32>
    %67 = tpu.matmul %64, %66, %cst_22 {dimension_numbers = #tpu.dot_dimension_numbers<[1], [0], [0], [1], [0, 0, 1, 1], [], []>} : vector<16x32xf32>, vector<32x32xf32>, vector<16x32xf32> -> vector<16x32xf32>
    %c0_23 = arith.constant 0 : index
    %c0_24 = arith.constant 0 : index
    %c0_25 = arith.constant 0 : index
    %68 = vector.load %arg6[%c0_23, %c0_24, %c0_25] : memref<2x1x32xf32, #tpu.memory_space<vmem>>, vector<1x1x32xf32>
    %69 = vector.shape_cast %68 : vector<1x1x32xf32> to vector<1x32xf32>
    %70 = vector.broadcast %69 : vector<1x32xf32> to vector<16x32xf32>
    %71 = arith.addf %67, %70 : vector<16x32xf32>
    %72 = arith.addf %71, %3 : vector<16x32xf32>
    %c0_26 = arith.constant 0 : index
    %c0_27 = arith.constant 0 : index
    %c0_28 = arith.constant 0 : index
    %73 = vector.load %arg7[%c0_26, %c0_27, %c0_28] : memref<2x1x32xf32, #tpu.memory_space<vmem>>, vector<1x1x32xf32>
    %74 = vector.shape_cast %73 : vector<1x1x32xf32> to vector<1x32xf32>
    %c0_29 = arith.constant 0 : index
    %c0_30 = arith.constant 0 : index
    %c0_31 = arith.constant 0 : index
    %75 = vector.load %arg8[%c0_29, %c0_30, %c0_31] : memref<2x1x32xf32, #tpu.memory_space<vmem>>, vector<1x1x32xf32>
    %76 = vector.shape_cast %75 : vector<1x1x32xf32> to vector<1x32xf32>
    %cst_32 = arith.constant dense<0.000000e+00> : vector<16xf32>
    %77 = vector.multi_reduction <add>, %72, %cst_32 [1] : vector<16x32xf32> to vector<16xf32>
    %78 = vector.shape_cast %77 : vector<16xf32> to vector<16x1xf32>
    %cst_33 = arith.constant 3.200000e+01 : f32
    %79 = vector.broadcast %cst_33 : f32 to vector<16x1xf32>
    %80 = arith.divf %78, %79 : vector<16x1xf32>
    %81 = vector.broadcast %80 : vector<16x1xf32> to vector<16x32xf32>
    %82 = arith.subf %72, %81 : vector<16x32xf32>
    %83 = arith.mulf %82, %82 : vector<16x32xf32>
    %cst_34 = arith.constant dense<0.000000e+00> : vector<16xf32>
    %84 = vector.multi_reduction <add>, %83, %cst_34 [1] : vector<16x32xf32> to vector<16xf32>
    %85 = vector.shape_cast %84 : vector<16xf32> to vector<16x1xf32>
    %cst_35 = arith.constant 3.200000e+01 : f32
    %86 = vector.broadcast %cst_35 : f32 to vector<16x1xf32>
    %87 = arith.divf %85, %86 : vector<16x1xf32>
    %88 = vector.broadcast %80 : vector<16x1xf32> to vector<16x32xf32>
    %89 = arith.subf %72, %88 : vector<16x32xf32>
    %cst_36 = arith.constant 9.99999974E-6 : f32
    %90 = vector.broadcast %cst_36 : f32 to vector<16x1xf32>
    %91 = arith.addf %87, %90 : vector<16x1xf32>
    %92 = math.rsqrt %91 : vector<16x1xf32>
    %93 = vector.broadcast %92 : vector<16x1xf32> to vector<16x32xf32>
    %94 = arith.mulf %89, %93 : vector<16x32xf32>
    %95 = vector.broadcast %74 : vector<1x32xf32> to vector<16x32xf32>
    %96 = arith.mulf %94, %95 : vector<16x32xf32>
    %97 = vector.broadcast %76 : vector<1x32xf32> to vector<16x32xf32>
    %98 = arith.addf %96, %97 : vector<16x32xf32>
    %c0_37 = arith.constant 0 : index
    %c0_38 = arith.constant 0 : index
    %c0_39 = arith.constant 0 : index
    %99 = vector.load %arg11[%c0_37, %c0_38, %c0_39] : memref<2x32x128xf32, #tpu.memory_space<vmem>>, vector<1x32x128xf32>
    %100 = vector.shape_cast %99 : vector<1x32x128xf32> to vector<32x128xf32>
    %cst_40 = arith.constant dense<0.000000e+00> : vector<16x128xf32>
    %101 = tpu.matmul %98, %100, %cst_40 {dimension_numbers = #tpu.dot_dimension_numbers<[1], [0], [0], [1], [0, 0, 1, 1], [], []>} : vector<16x32xf32>, vector<32x128xf32>, vector<16x128xf32> -> vector<16x128xf32>
    %c0_41 = arith.constant 0 : index
    %c0_42 = arith.constant 0 : index
    %c0_43 = arith.constant 0 : index
    %102 = vector.load %arg12[%c0_41, %c0_42, %c0_43] : memref<2x1x128xf32, #tpu.memory_space<vmem>>, vector<1x1x128xf32>
    %103 = vector.shape_cast %102 : vector<1x1x128xf32> to vector<1x128xf32>
    %104 = vector.broadcast %103 : vector<1x128xf32> to vector<16x128xf32>
    %105 = arith.addf %101, %104 : vector<16x128xf32>
    %cst_44 = arith.constant 0.000000e+00 : f32
    %106 = vector.broadcast %cst_44 : f32 to vector<16x128xf32>
    %107 = arith.maximumf %105, %106 : vector<16x128xf32>
    %c0_45 = arith.constant 0 : index
    %c0_46 = arith.constant 0 : index
    %c0_47 = arith.constant 0 : index
    %108 = vector.load %arg13[%c0_45, %c0_46, %c0_47] : memref<2x128x32xf32, #tpu.memory_space<vmem>>, vector<1x128x32xf32>
    %109 = vector.shape_cast %108 : vector<1x128x32xf32> to vector<128x32xf32>
    %cst_48 = arith.constant dense<0.000000e+00> : vector<16x32xf32>
    %110 = tpu.matmul %107, %109, %cst_48 {dimension_numbers = #tpu.dot_dimension_numbers<[1], [0], [0], [1], [0, 0, 1, 1], [], []>} : vector<16x128xf32>, vector<128x32xf32>, vector<16x32xf32> -> vector<16x32xf32>
    %c0_49 = arith.constant 0 : index
    %c0_50 = arith.constant 0 : index
    %c0_51 = arith.constant 0 : index
    %111 = vector.load %arg14[%c0_49, %c0_50, %c0_51] : memref<2x1x32xf32, #tpu.memory_space<vmem>>, vector<1x1x32xf32>
    %112 = vector.shape_cast %111 : vector<1x1x32xf32> to vector<1x32xf32>
    %113 = vector.broadcast %112 : vector<1x32xf32> to vector<16x32xf32>
    %114 = arith.addf %110, %113 : vector<16x32xf32>
    %115 = arith.addf %114, %98 : vector<16x32xf32>
    %c0_52 = arith.constant 0 : index
    %c0_53 = arith.constant 0 : index
    %c0_54 = arith.constant 0 : index
    %116 = vector.load %arg9[%c0_52, %c0_53, %c0_54] : memref<2x1x32xf32, #tpu.memory_space<vmem>>, vector<1x1x32xf32>
    %117 = vector.shape_cast %116 : vector<1x1x32xf32> to vector<1x32xf32>
    %c0_55 = arith.constant 0 : index
    %c0_56 = arith.constant 0 : index
    %c0_57 = arith.constant 0 : index
    %118 = vector.load %arg10[%c0_55, %c0_56, %c0_57] : memref<2x1x32xf32, #tpu.memory_space<vmem>>, vector<1x1x32xf32>
    %119 = vector.shape_cast %118 : vector<1x1x32xf32> to vector<1x32xf32>
    %cst_58 = arith.constant dense<0.000000e+00> : vector<16xf32>
    %120 = vector.multi_reduction <add>, %115, %cst_58 [1] : vector<16x32xf32> to vector<16xf32>
    %121 = vector.shape_cast %120 : vector<16xf32> to vector<16x1xf32>
    %cst_59 = arith.constant 3.200000e+01 : f32
    %122 = vector.broadcast %cst_59 : f32 to vector<16x1xf32>
    %123 = arith.divf %121, %122 : vector<16x1xf32>
    %124 = vector.broadcast %123 : vector<16x1xf32> to vector<16x32xf32>
    %125 = arith.subf %115, %124 : vector<16x32xf32>
    %126 = arith.mulf %125, %125 : vector<16x32xf32>
    %cst_60 = arith.constant dense<0.000000e+00> : vector<16xf32>
    %127 = vector.multi_reduction <add>, %126, %cst_60 [1] : vector<16x32xf32> to vector<16xf32>
    %128 = vector.shape_cast %127 : vector<16xf32> to vector<16x1xf32>
    %cst_61 = arith.constant 3.200000e+01 : f32
    %129 = vector.broadcast %cst_61 : f32 to vector<16x1xf32>
    %130 = arith.divf %128, %129 : vector<16x1xf32>
    %131 = vector.broadcast %123 : vector<16x1xf32> to vector<16x32xf32>
    %132 = arith.subf %115, %131 : vector<16x32xf32>
    %cst_62 = arith.constant 9.99999974E-6 : f32
    %133 = vector.broadcast %cst_62 : f32 to vector<16x1xf32>
    %134 = arith.addf %130, %133 : vector<16x1xf32>
    %135 = math.rsqrt %134 : vector<16x1xf32>
    %136 = vector.broadcast %135 : vector<16x1xf32> to vector<16x32xf32>
    %137 = arith.mulf %132, %136 : vector<16x32xf32>
    %138 = vector.broadcast %117 : vector<1x32xf32> to vector<16x32xf32>
    %139 = arith.mulf %137, %138 : vector<16x32xf32>
    %140 = vector.broadcast %119 : vector<1x32xf32> to vector<16x32xf32>
    %141 = arith.addf %139, %140 : vector<16x32xf32>
    %c1_63 = arith.constant 1 : index
    %c0_64 = arith.constant 0 : index
    %c0_65 = arith.constant 0 : index
    %142 = vector.load %arg4[%c1_63, %c0_64, %c0_65] : memref<2x32x128xf32, #tpu.memory_space<vmem>>, vector<1x32x128xf32>
    %143 = vector.shape_cast %142 : vector<1x32x128xf32> to vector<32x128xf32>
    %cst_66 = arith.constant dense<0.000000e+00> : vector<16x128xf32>
    %144 = tpu.matmul %141, %143, %cst_66 {dimension_numbers = #tpu.dot_dimension_numbers<[1], [0], [0], [1], [0, 0, 1, 1], [], []>} : vector<16x32xf32>, vector<32x128xf32>, vector<16x128xf32> -> vector<16x128xf32>
    %145 = vector.extract_strided_slice %144 {offsets = [0, 0], sizes = [16, 32], strides = [1, 1]} : vector<16x128xf32> to vector<16x32xf32>
    %146 = vector.extract_strided_slice %144 {offsets = [0, 32], sizes = [16, 32], strides = [1, 1]} : vector<16x128xf32> to vector<16x32xf32>
    %147 = vector.extract_strided_slice %144 {offsets = [0, 64], sizes = [16, 32], strides = [1, 1]} : vector<16x128xf32> to vector<16x32xf32>
    %148 = vector.extract_strided_slice %145 {offsets = [0, 0], sizes = [8, 32], strides = [1, 1]} : vector<16x32xf32> to vector<8x32xf32>
    %149 = vector.shape_cast %148 : vector<8x32xf32> to vector<8x4x8xf32>
    %150 = vector.extract_strided_slice %146 {offsets = [0, 0], sizes = [8, 32], strides = [1, 1]} : vector<16x32xf32> to vector<8x32xf32>
    %151 = vector.shape_cast %150 : vector<8x32xf32> to vector<8x4x8xf32>
    %152 = vector.extract_strided_slice %147 {offsets = [0, 0], sizes = [8, 32], strides = [1, 1]} : vector<16x32xf32> to vector<8x32xf32>
    %153 = vector.shape_cast %152 : vector<8x32xf32> to vector<8x4x8xf32>
    "tpu.trace_start"() <{level = 10 : i32, message = "qhd,khd->hqk"}> : () -> ()
    %cst_67 = arith.constant dense<0.000000e+00> : vector<4x8x8xf32>
    %154 = tpu.matmul %149, %151, %cst_67 {dimension_numbers = #tpu.dot_dimension_numbers<[2], [2], [0], [0], [0, 1, 0, 0, 1, 0], [1], [1]>} : vector<8x4x8xf32>, vector<8x4x8xf32>, vector<4x8x8xf32> -> vector<4x8x8xf32>
    "tpu.trace_stop"() : () -> ()
    %cst_68 = arith.constant 0.176776692 : f32
    %155 = vector.broadcast %cst_68 : f32 to vector<4x8x8xf32>
    %156 = arith.mulf %154, %155 : vector<4x8x8xf32>
    %c0_69 = arith.constant 0 : index
    %c0_70 = arith.constant 0 : index
    %157 = vector.load %arg3[%c0_69, %c0_70] : memref<2x8xf32, #tpu.memory_space<vmem>>, vector<1x8xf32>
    %158 = vector.shape_cast %157 : vector<1x8xf32> to vector<8xf32>
    %159 = vector.shape_cast %158 : vector<8xf32> to vector<1x1x8xf32>
    %160 = vector.broadcast %159 : vector<1x1x8xf32> to vector<4x8x8xf32>
    %161 = arith.addf %156, %160 : vector<4x8x8xf32>
    %cst_71 = arith.constant dense<0xFF800000> : vector<4x8xf32>
    %162 = vector.multi_reduction <maximumf>, %161, %cst_71 [2] : vector<4x8x8xf32> to vector<4x8xf32>
    %163 = vector.shape_cast %162 : vector<4x8xf32> to vector<4x8x1xf32>
    %164 = vector.broadcast %163 : vector<4x8x1xf32> to vector<4x8x8xf32>
    %165 = arith.subf %161, %164 : vector<4x8x8xf32>
    %166 = math.exp %165 : vector<4x8x8xf32>
    %cst_72 = arith.constant dense<0.000000e+00> : vector<4x8xf32>
    %167 = vector.multi_reduction <add>, %166, %cst_72 [2] : vector<4x8x8xf32> to vector<4x8xf32>
    %168 = vector.shape_cast %167 : vector<4x8xf32> to vector<4x8x1xf32>
    %169 = tpu.reciprocal %168 : vector<4x8x1xf32> -> vector<4x8x1xf32>
    %170 = vector.broadcast %169 : vector<4x8x1xf32> to vector<4x8x8xf32>
    %171 = arith.mulf %166, %170 : vector<4x8x8xf32>
    "tpu.trace_start"() <{level = 10 : i32, message = "hqk,khd->qhd"}> : () -> ()
    %cst_73 = arith.constant dense<0.000000e+00> : vector<4x8x8xf32>
    %172 = tpu.matmul %153, %171, %cst_73 {dimension_numbers = #tpu.dot_dimension_numbers<[0], [2], [2], [1], [0, 1, 0, 2, 1, 1], [1], [0]>} : vector<8x4x8xf32>, vector<4x8x8xf32>, vector<4x8x8xf32> -> vector<4x8x8xf32>
    %173 = tpu.transpose %172, [2, 0, 1] : vector<4x8x8xf32> -> vector<8x4x8xf32>
    "tpu.trace_stop"() : () -> ()
    %174 = vector.shape_cast %173 : vector<8x4x8xf32> to vector<8x32xf32>
    %175 = vector.extract_strided_slice %145 {offsets = [8, 0], sizes = [8, 32], strides = [1, 1]} : vector<16x32xf32> to vector<8x32xf32>
    %176 = vector.shape_cast %175 : vector<8x32xf32> to vector<8x4x8xf32>
    %177 = vector.extract_strided_slice %146 {offsets = [8, 0], sizes = [8, 32], strides = [1, 1]} : vector<16x32xf32> to vector<8x32xf32>
    %178 = vector.shape_cast %177 : vector<8x32xf32> to vector<8x4x8xf32>
    %179 = vector.extract_strided_slice %147 {offsets = [8, 0], sizes = [8, 32], strides = [1, 1]} : vector<16x32xf32> to vector<8x32xf32>
    %180 = vector.shape_cast %179 : vector<8x32xf32> to vector<8x4x8xf32>
    "tpu.trace_start"() <{level = 10 : i32, message = "qhd,khd->hqk"}> : () -> ()
    %cst_74 = arith.constant dense<0.000000e+00> : vector<4x8x8xf32>
    %181 = tpu.matmul %176, %178, %cst_74 {dimension_numbers = #tpu.dot_dimension_numbers<[2], [2], [0], [0], [0, 1, 0, 0, 1, 0], [1], [1]>} : vector<8x4x8xf32>, vector<8x4x8xf32>, vector<4x8x8xf32> -> vector<4x8x8xf32>
    "tpu.trace_stop"() : () -> ()
    %cst_75 = arith.constant 0.176776692 : f32
    %182 = vector.broadcast %cst_75 : f32 to vector<4x8x8xf32>
    %183 = arith.mulf %181, %182 : vector<4x8x8xf32>
    %c1_76 = arith.constant 1 : index
    %c0_77 = arith.constant 0 : index
    %184 = vector.load %arg3[%c1_76, %c0_77] : memref<2x8xf32, #tpu.memory_space<vmem>>, vector<1x8xf32>
    %185 = vector.shape_cast %184 : vector<1x8xf32> to vector<8xf32>
    %186 = vector.shape_cast %185 : vector<8xf32> to vector<1x1x8xf32>
    %187 = vector.broadcast %186 : vector<1x1x8xf32> to vector<4x8x8xf32>
    %188 = arith.addf %183, %187 : vector<4x8x8xf32>
    %cst_78 = arith.constant dense<0xFF800000> : vector<4x8xf32>
    %189 = vector.multi_reduction <maximumf>, %188, %cst_78 [2] : vector<4x8x8xf32> to vector<4x8xf32>
    %190 = vector.shape_cast %189 : vector<4x8xf32> to vector<4x8x1xf32>
    %191 = vector.broadcast %190 : vector<4x8x1xf32> to vector<4x8x8xf32>
    %192 = arith.subf %188, %191 : vector<4x8x8xf32>
    %193 = math.exp %192 : vector<4x8x8xf32>
    %cst_79 = arith.constant dense<0.000000e+00> : vector<4x8xf32>
    %194 = vector.multi_reduction <add>, %193, %cst_79 [2] : vector<4x8x8xf32> to vector<4x8xf32>
    %195 = vector.shape_cast %194 : vector<4x8xf32> to vector<4x8x1xf32>
    %196 = tpu.reciprocal %195 : vector<4x8x1xf32> -> vector<4x8x1xf32>
    %197 = vector.broadcast %196 : vector<4x8x1xf32> to vector<4x8x8xf32>
    %198 = arith.mulf %193, %197 : vector<4x8x8xf32>
    "tpu.trace_start"() <{level = 10 : i32, message = "hqk,khd->qhd"}> : () -> ()
    %cst_80 = arith.constant dense<0.000000e+00> : vector<4x8x8xf32>
    %199 = tpu.matmul %180, %198, %cst_80 {dimension_numbers = #tpu.dot_dimension_numbers<[0], [2], [2], [1], [0, 1, 0, 2, 1, 1], [1], [0]>} : vector<8x4x8xf32>, vector<4x8x8xf32>, vector<4x8x8xf32> -> vector<4x8x8xf32>
    %200 = tpu.transpose %199, [2, 0, 1] : vector<4x8x8xf32> -> vector<8x4x8xf32>
    "tpu.trace_stop"() : () -> ()
    %201 = vector.shape_cast %200 : vector<8x4x8xf32> to vector<8x32xf32>
    %202 = tpu.concatenate %174, %201 in 0 : vector<8x32xf32>, vector<8x32xf32> -> vector<16x32xf32>
    %c1_81 = arith.constant 1 : index
    %c0_82 = arith.constant 0 : index
    %c0_83 = arith.constant 0 : index
    %203 = vector.load %arg5[%c1_81, %c0_82, %c0_83] : memref<2x32x32xf32, #tpu.memory_space<vmem>>, vector<1x32x32xf32>
    %204 = vector.shape_cast %203 : vector<1x32x32xf32> to vector<32x32xf32>
    %cst_84 = arith.constant dense<0.000000e+00> : vector<16x32xf32>
    %205 = tpu.matmul %202, %204, %cst_84 {dimension_numbers = #tpu.dot_dimension_numbers<[1], [0], [0], [1], [0, 0, 1, 1], [], []>} : vector<16x32xf32>, vector<32x32xf32>, vector<16x32xf32> -> vector<16x32xf32>
    %c1_85 = arith.constant 1 : index
    %c0_86 = arith.constant 0 : index
    %c0_87 = arith.constant 0 : index
    %206 = vector.load %arg6[%c1_85, %c0_86, %c0_87] : memref<2x1x32xf32, #tpu.memory_space<vmem>>, vector<1x1x32xf32>
    %207 = vector.shape_cast %206 : vector<1x1x32xf32> to vector<1x32xf32>
    %208 = vector.broadcast %207 : vector<1x32xf32> to vector<16x32xf32>
    %209 = arith.addf %205, %208 : vector<16x32xf32>
    %210 = arith.addf %209, %141 : vector<16x32xf32>
    %c1_88 = arith.constant 1 : index
    %c0_89 = arith.constant 0 : index
    %c0_90 = arith.constant 0 : index
    %211 = vector.load %arg7[%c1_88, %c0_89, %c0_90] : memref<2x1x32xf32, #tpu.memory_space<vmem>>, vector<1x1x32xf32>
    %212 = vector.shape_cast %211 : vector<1x1x32xf32> to vector<1x32xf32>
    %c1_91 = arith.constant 1 : index
    %c0_92 = arith.constant 0 : index
    %c0_93 = arith.constant 0 : index
    %213 = vector.load %arg8[%c1_91, %c0_92, %c0_93] : memref<2x1x32xf32, #tpu.memory_space<vmem>>, vector<1x1x32xf32>
    %214 = vector.shape_cast %213 : vector<1x1x32xf32> to vector<1x32xf32>
    %cst_94 = arith.constant dense<0.000000e+00> : vector<16xf32>
    %215 = vector.multi_reduction <add>, %210, %cst_94 [1] : vector<16x32xf32> to vector<16xf32>
    %216 = vector.shape_cast %215 : vector<16xf32> to vector<16x1xf32>
    %cst_95 = arith.constant 3.200000e+01 : f32
    %217 = vector.broadcast %cst_95 : f32 to vector<16x1xf32>
    %218 = arith.divf %216, %217 : vector<16x1xf32>
    %219 = vector.broadcast %218 : vector<16x1xf32> to vector<16x32xf32>
    %220 = arith.subf %210, %219 : vector<16x32xf32>
    %221 = arith.mulf %220, %220 : vector<16x32xf32>
    %cst_96 = arith.constant dense<0.000000e+00> : vector<16xf32>
    %222 = vector.multi_reduction <add>, %221, %cst_96 [1] : vector<16x32xf32> to vector<16xf32>
    %223 = vector.shape_cast %222 : vector<16xf32> to vector<16x1xf32>
    %cst_97 = arith.constant 3.200000e+01 : f32
    %224 = vector.broadcast %cst_97 : f32 to vector<16x1xf32>
    %225 = arith.divf %223, %224 : vector<16x1xf32>
    %226 = vector.broadcast %218 : vector<16x1xf32> to vector<16x32xf32>
    %227 = arith.subf %210, %226 : vector<16x32xf32>
    %cst_98 = arith.constant 9.99999974E-6 : f32
    %228 = vector.broadcast %cst_98 : f32 to vector<16x1xf32>
    %229 = arith.addf %225, %228 : vector<16x1xf32>
    %230 = math.rsqrt %229 : vector<16x1xf32>
    %231 = vector.broadcast %230 : vector<16x1xf32> to vector<16x32xf32>
    %232 = arith.mulf %227, %231 : vector<16x32xf32>
    %233 = vector.broadcast %212 : vector<1x32xf32> to vector<16x32xf32>
    %234 = arith.mulf %232, %233 : vector<16x32xf32>
    %235 = vector.broadcast %214 : vector<1x32xf32> to vector<16x32xf32>
    %236 = arith.addf %234, %235 : vector<16x32xf32>
    %c1_99 = arith.constant 1 : index
    %c0_100 = arith.constant 0 : index
    %c0_101 = arith.constant 0 : index
    %237 = vector.load %arg11[%c1_99, %c0_100, %c0_101] : memref<2x32x128xf32, #tpu.memory_space<vmem>>, vector<1x32x128xf32>
    %238 = vector.shape_cast %237 : vector<1x32x128xf32> to vector<32x128xf32>
    %cst_102 = arith.constant dense<0.000000e+00> : vector<16x128xf32>
    %239 = tpu.matmul %236, %238, %cst_102 {dimension_numbers = #tpu.dot_dimension_numbers<[1], [0], [0], [1], [0, 0, 1, 1], [], []>} : vector<16x32xf32>, vector<32x128xf32>, vector<16x128xf32> -> vector<16x128xf32>
    %c1_103 = arith.constant 1 : index
    %c0_104 = arith.constant 0 : index
    %c0_105 = arith.constant 0 : index
    %240 = vector.load %arg12[%c1_103, %c0_104, %c0_105] : memref<2x1x128xf32, #tpu.memory_space<vmem>>, vector<1x1x128xf32>
    %241 = vector.shape_cast %240 : vector<1x1x128xf32> to vector<1x128xf32>
    %242 = vector.broadcast %241 : vector<1x128xf32> to vector<16x128xf32>
    %243 = arith.addf %239, %242 : vector<16x128xf32>
    %cst_106 = arith.constant 0.000000e+00 : f32
    %244 = vector.broadcast %cst_106 : f32 to vector<16x128xf32>
    %245 = arith.maximumf %243, %244 : vector<16x128xf32>
    %c1_107 = arith.constant 1 : index
    %c0_108 = arith.constant 0 : index
    %c0_109 = arith.constant 0 : index
    %246 = vector.load %arg13[%c1_107, %c0_108, %c0_109] : memref<2x128x32xf32, #tpu.memory_space<vmem>>, vector<1x128x32xf32>
    %247 = vector.shape_cast %246 : vector<1x128x32xf32> to vector<128x32xf32>
    %cst_110 = arith.constant dense<0.000000e+00> : vector<16x32xf32>
    %248 = tpu.matmul %245, %247, %cst_110 {dimension_numbers = #tpu.dot_dimension_numbers<[1], [0], [0], [1], [0, 0, 1, 1], [], []>} : vector<16x128xf32>, vector<128x32xf32>, vector<16x32xf32> -> vector<16x32xf32>
    %c1_111 = arith.constant 1 : index
    %c0_112 = arith.constant 0 : index
    %c0_113 = arith.constant 0 : index
    %249 = vector.load %arg14[%c1_111, %c0_112, %c0_113] : memref<2x1x32xf32, #tpu.memory_space<vmem>>, vector<1x1x32xf32>
    %250 = vector.shape_cast %249 : vector<1x1x32xf32> to vector<1x32xf32>
    %251 = vector.broadcast %250 : vector<1x32xf32> to vector<16x32xf32>
    %252 = arith.addf %248, %251 : vector<16x32xf32>
    %253 = arith.addf %252, %236 : vector<16x32xf32>
    %c1_114 = arith.constant 1 : index
    %c0_115 = arith.constant 0 : index
    %c0_116 = arith.constant 0 : index
    %254 = vector.load %arg9[%c1_114, %c0_115, %c0_116] : memref<2x1x32xf32, #tpu.memory_space<vmem>>, vector<1x1x32xf32>
    %255 = vector.shape_cast %254 : vector<1x1x32xf32> to vector<1x32xf32>
    %c1_117 = arith.constant 1 : index
    %c0_118 = arith.constant 0 : index
    %c0_119 = arith.constant 0 : index
    %256 = vector.load %arg10[%c1_117, %c0_118, %c0_119] : memref<2x1x32xf32, #tpu.memory_space<vmem>>, vector<1x1x32xf32>
    %257 = vector.shape_cast %256 : vector<1x1x32xf32> to vector<1x32xf32>
    %cst_120 = arith.constant dense<0.000000e+00> : vector<16xf32>
    %258 = vector.multi_reduction <add>, %253, %cst_120 [1] : vector<16x32xf32> to vector<16xf32>
    %259 = vector.shape_cast %258 : vector<16xf32> to vector<16x1xf32>
    %cst_121 = arith.constant 3.200000e+01 : f32
    %260 = vector.broadcast %cst_121 : f32 to vector<16x1xf32>
    %261 = arith.divf %259, %260 : vector<16x1xf32>
    %262 = vector.broadcast %261 : vector<16x1xf32> to vector<16x32xf32>
    %263 = arith.subf %253, %262 : vector<16x32xf32>
    %264 = arith.mulf %263, %263 : vector<16x32xf32>
    %cst_122 = arith.constant dense<0.000000e+00> : vector<16xf32>
    %265 = vector.multi_reduction <add>, %264, %cst_122 [1] : vector<16x32xf32> to vector<16xf32>
    %266 = vector.shape_cast %265 : vector<16xf32> to vector<16x1xf32>
    %cst_123 = arith.constant 3.200000e+01 : f32
    %267 = vector.broadcast %cst_123 : f32 to vector<16x1xf32>
    %268 = arith.divf %266, %267 : vector<16x1xf32>
    %269 = vector.broadcast %261 : vector<16x1xf32> to vector<16x32xf32>
    %270 = arith.subf %253, %269 : vector<16x32xf32>
    %cst_124 = arith.constant 9.99999974E-6 : f32
    %271 = vector.broadcast %cst_124 : f32 to vector<16x1xf32>
    %272 = arith.addf %268, %271 : vector<16x1xf32>
    %273 = math.rsqrt %272 : vector<16x1xf32>
    %274 = vector.broadcast %273 : vector<16x1xf32> to vector<16x32xf32>
    %275 = arith.mulf %270, %274 : vector<16x32xf32>
    %276 = vector.broadcast %255 : vector<1x32xf32> to vector<16x32xf32>
    %277 = arith.mulf %275, %276 : vector<16x32xf32>
    %278 = vector.broadcast %257 : vector<1x32xf32> to vector<16x32xf32>
    %279 = arith.addf %277, %278 : vector<16x32xf32>
    %c0_125 = arith.constant 0 : index
    %c0_126 = arith.constant 0 : index
    %280 = vector.load %arg15[%c0_125, %c0_126] : memref<16x32xf32, #tpu.memory_space<vmem>>, vector<16x32xf32>
    tpu.vector_store %arg15[%c0_125, %c0_126], %279 {strides = array<i32>} : memref<16x32xf32, #tpu.memory_space<vmem>>, vector<16x32xf32>,
    return
  }
  func.func @transform_0(%arg0: i32) -> (i32, i32) {
    %c0_i32 = arith.constant 0 : i32
    %c0_i32_0 = arith.constant 0 : i32
    %c0_i32_1 = arith.constant 0 : i32
    return %c0_i32, %c0_i32_0 : i32, i32
  }
  func.func @transform_1(%arg0: i32) -> (i32, i32) {
    %c0_i32 = arith.constant 0 : i32
    %c0_i32_0 = arith.constant 0 : i32
    %c0_i32_1 = arith.constant 0 : i32
    return %c0_i32, %c0_i32_0 : i32, i32
  }
  func.func @transform_2(%arg0: i32) -> (i32, i32) {
    %c0_i32 = arith.constant 0 : i32
    %c0_i32_0 = arith.constant 0 : i32
    %c0_i32_1 = arith.constant 0 : i32
    return %c0_i32, %c0_i32_0 : i32, i32
  }
  func.func @transform_3(%arg0: i32) -> (i32, i32, i32) {
    %c0_i32 = arith.constant 0 : i32
    %c0_i32_0 = arith.constant 0 : i32
    %c0_i32_1 = arith.constant 0 : i32
    %c0_i32_2 = arith.constant 0 : i32
    return %c0_i32, %c0_i32_0, %c0_i32_1 : i32, i32, i32
  }
  func.func @transform_4(%arg0: i32) -> (i32, i32, i32) {
    %c0_i32 = arith.constant 0 : i32
    %c0_i32_0 = arith.constant 0 : i32
    %c0_i32_1 = arith.constant 0 : i32
    %c0_i32_2 = arith.constant 0 : i32
    return %c0_i32, %c0_i32_0, %c0_i32_1 : i32, i32, i32
  }
  func.func @transform_5(%arg0: i32) -> (i32, i32, i32) {
    %c0_i32 = arith.constant 0 : i32
    %c0_i32_0 = arith.constant 0 : i32
    %c0_i32_1 = arith.constant 0 : i32
    %c0_i32_2 = arith.constant 0 : i32
    return %c0_i32, %c0_i32_0, %c0_i32_1 : i32, i32, i32
  }
  func.func @transform_6(%arg0: i32) -> (i32, i32, i32) {
    %c0_i32 = arith.constant 0 : i32
    %c0_i32_0 = arith.constant 0 : i32
    %c0_i32_1 = arith.constant 0 : i32
    %c0_i32_2 = arith.constant 0 : i32
    return %c0_i32, %c0_i32_0, %c0_i32_1 : i32, i32, i32
  }
  func.func @transform_7(%arg0: i32) -> (i32, i32, i32) {
    %c0_i32 = arith.constant 0 : i32
    %c0_i32_0 = arith.constant 0 : i32
    %c0_i32_1 = arith.constant 0 : i32
    %c0_i32_2 = arith.constant 0 : i32
    return %c0_i32, %c0_i32_0, %c0_i32_1 : i32, i32, i32
  }
  func.func @transform_8(%arg0: i32) -> (i32, i32, i32) {
    %c0_i32 = arith.constant 0 : i32
    %c0_i32_0 = arith.constant 0 : i32
    %c0_i32_1 = arith.constant 0 : i32
    %c0_i32_2 = arith.constant 0 : i32
    return %c0_i32, %c0_i32_0, %c0_i32_1 : i32, i32, i32
  }
  func.func @transform_9(%arg0: i32) -> (i32, i32, i32) {
    %c0_i32 = arith.constant 0 : i32
    %c0_i32_0 = arith.constant 0 : i32
    %c0_i32_1 = arith.constant 0 : i32
    %c0_i32_2 = arith.constant 0 : i32
    return %c0_i32, %c0_i32_0, %c0_i32_1 : i32, i32, i32
  }
  func.func @transform_10(%arg0: i32) -> (i32, i32, i32) {
    %c0_i32 = arith.constant 0 : i32
    %c0_i32_0 = arith.constant 0 : i32
    %c0_i32_1 = arith.constant 0 : i32
    %c0_i32_2 = arith.constant 0 : i32
    return %c0_i32, %c0_i32_0, %c0_i32_1 : i32, i32, i32
  }
  func.func @transform_11(%arg0: i32) -> (i32, i32, i32) {
    %c0_i32 = arith.constant 0 : i32
    %c0_i32_0 = arith.constant 0 : i32
    %c0_i32_1 = arith.constant 0 : i32
    %c0_i32_2 = arith.constant 0 : i32
    return %c0_i32, %c0_i32_0, %c0_i32_1 : i32, i32, i32
  }
  func.func @transform_12(%arg0: i32) -> (i32, i32, i32) {
    %c0_i32 = arith.constant 0 : i32
    %c0_i32_0 = arith.constant 0 : i32
    %c0_i32_1 = arith.constant 0 : i32
    %c0_i32_2 = arith.constant 0 : i32
    return %c0_i32, %c0_i32_0, %c0_i32_1 : i32, i32, i32
  }
  func.func @transform_13(%arg0: i32) -> (i32, i32, i32) {
    %c0_i32 = arith.constant 0 : i32
    %c0_i32_0 = arith.constant 0 : i32
    %c0_i32_1 = arith.constant 0 : i32
    %c0_i32_2 = arith.constant 0 : i32
    return %c0_i32, %c0_i32_0, %c0_i32_1 : i32, i32, i32
  }
  func.func @transform_14(%arg0: i32) -> (i32, i32) {
    %c0_i32 = arith.constant 0 : i32
    %c0_i32_0 = arith.constant 0 : i32
    %c0_i32_1 = arith.constant 0 : i32
    return %c0_i32, %c0_i32_0 : i32, i32
  }
}

</mosaic_0001>

<bundles_post_ra>
// kernel: tpu_custom_call.1
= control target key start
LH: loop header
LB: loop body
LE: loop exit
PB: predicated region body
PF: predicated region fallthrough
CT: control target
= control target key end

     0   :  { %vm57_vm0 = vcmask 261120   ;;  %s7461_s0 = inlined_call_operand.vmem [shape: f32[16,32], index: 0, kind: input, shape index: {}]   ;;  %s7462_s1 = inlined_call_operand.vmem [shape: f32[8,32], index: 1, kind: input, shape index: {}]   ;;  %s7463_s2 = inlined_call_operand.vmem [shape: f32[2,8], index: 2, kind: input, shape index: {}]   ;;  %s7464_s3 = inlined_call_operand.vmem [shape: f32[2,32,128], index: 3, kind: input, shape index: {}]   ;;  %s7465_s4 = inlined_call_operand.vmem [shape: f32[2,32,32], index: 4, kind: input, shape index: {}]   ;;  %s7466_s5 = inlined_call_operand.vmem [shape: f32[2,1,32], index: 5, kind: input, shape index: {}]   ;;  %s7467_s6 = inlined_call_operand.vmem [shape: f32[2,1,32], index: 6, kind: input, shape index: {}]   ;;  %s7468_s7 = inlined_call_operand.vmem [shape: f32[2,1,32], index: 7, kind: input, shape index: {}]   ;;  %s7469_s8 = inlined_call_operand.vmem [shape: f32[2,1,32], index: 8, kind: input, shape index: {}]   ;;  %s7470_s9 = inlined_call_operand.vmem [shape: f32[2,1,32], index: 9, kind: input, shape index: {}]   ;;  %s7471_s10 = inlined_call_operand.vmem [shape: f32[2,32,128], index: 10, kind: input, shape index: {}]   ;;  %s7472_s11 = inlined_call_operand.vmem [shape: f32[2,1,128], index: 11, kind: input, shape index: {}]   ;;  %s7473_s12 = inlined_call_operand.vmem [shape: f32[2,128,32], index: 12, kind: input, shape index: {}]   ;;  %s7474_s13 = inlined_call_operand.vmem [shape: f32[2,1,32], index: 13, kind: input, shape index: {}]   ;;  %s7475_s14 = inlined_call_operand.hbm [shape: f32[16,32], index: 14, kind: output, shape index: {}]  }
   0x1   :  { %v53_v0 = vld [vmem:[%s7464_s3] sm:$0xff]  ;;  %v54_v1 = vld [vmem:[%s7464_s3 + $0x8] sm:$0xff]  ;;  %v55_v2 = vld [vmem:[%s7464_s3 + $0x10] sm:$0xff] }
   0x2   :  { %v6422_v3 = vpack.c.bf16 %v54_v1, %v53_v0  ;;  %v56_v4 = vld [vmem:[%s7464_s3 + $0x18] sm:$0xff]  ;;  %v48_v5 = vld [vmem:[%s7462_s1] sm:$0xff] }
   0x3   :  { %v49_v6 = vld [vmem:[%s7461_s0] sm:$0xff]  ;;  %v6426_v7 = vpack.c.bf16 %v56_v4, %v55_v2 }
   0x4   :  { %v6759_v8 = vadd.f32 %v49_v6, %v48_v5 }
   0x5   :  { %19 = vsyncpa [#allocation3], 0  ;;  %6423 = vmatprep.subr.bf16.mxu0 %v6422_v3  ;;  %v50_v9 = vld [vmem:[%s7461_s0 + $0x8] sm:$0xff]  ;;  %s6652_s1 = smov 104   ;;  %s6653_s27 = smov 120   ;;  %v6656_v13 = vmov 0.0  }
   0x6   :  { %6425 = vmatpush3.bf16.msra.mxu0 %v6422_v3  ;;  %6134 = vmatprep.mubr.msk.f32.mxu0 %vm57_vm0, %v6759_v8  ;;  %v6766_v10 = vadd.f32 %v50_v9, %v48_v5  ;;  %s6654_s0 = smov 96   ;;  %s6655_s28 = smov 112   ;;  %vm6657_vm1 = vmmov 0   ;;  %vm286_vm2 = vcmask 64512   ;;  %v5875_v26 = vld [vmem:[%s7463_s2] ss:$0 sm:$0xff] }
   0x7   :  { %6427 = vmatprep.subr.bf16.mxu0 %v6426_v7  ;;  %6137 = vmatprep.subr.mxu1 %v6656_v13  ;;  %s6658_s15 = smov 64   ;;  %s6661_s18 = smov 16   ;;  %vm1353_vm3 = vcmask 130048   ;;  %vm1355_vm4 = vcmask 195584  }
   0x8   :  { %6139 = vmatprep.mubr.msk.f32.mxu1 %vm6657_vm1, %v6656_v13  ;;  %s6662_s23 = smov 24   ;;  %s6663_s24 = smov 8  }
   0x9   :  { %s6664_s29 = smov [#allocation2]  }
   0xa   :  { %6429 = vmatpush3.bf16.msra.mxu0 %v6426_v7  ;;  %s5858_s30 = sshll.u32 %s6664_s29, 4  ;;  %s5859_s30 = int_to_ptr.vmem [resolvable:$true] %s5858_s30 }
   0xb   :  { %6152 = vmatprep.subr.mxu0 %v6656_v13  ;;  %p6633_p1 = scmp.lt.s32.totalorder %s5859_s30, %s5859_s30 }
   0xd   :  { %6135 = vmatmul.mubr.msk.f32.vlgmr.msra.gmra.mrb[0].mxu0 %vm57_vm0, %v6766_v10 }
   0xe   :  { %6154 = vmatprep.mubr.msk.f32.mxu0 %vm6657_vm1, %v6656_v13 }
  0xe0   :  { %v6770_v11 = vpop.f32.mrb[0].mxu0 }
  0xe1   :  { %v6772_v12 = vpop.f32.mrb[1].mxu0 }
  0xe2   :  { %144 = vrot.lane.b32.xlu1 %v6772_v12, %s6652_s1  ;;  %140 = vrot.lane.b32.xlu0 %v6772_v12, %s6653_s27 }
  0xe6   :  { %146 = vrot.lane.b32.xlu1 %v6772_v12, %s6654_s0  ;;  %142 = vrot.lane.b32.xlu0 %v6772_v12, %s6655_s28 }
 0x154   :  { %v6784_v14 = vpop.permute.xlu0 %140  ;;  %v6788_v15 = vpop.permute.xlu1 %144 }
 0x155   :  { %148 = vrot.lane.b32.xlu0 %v6784_v14, %s6654_s0 }
 0x158   :  { %v6790_v16 = vpop.permute.xlu0 %142  ;;  %v147_v17 = vpop.permute.xlu1 %146 }
 0x159   :  { %152 = vrot.lane.b32.xlu0 %v6788_v15, %s6654_s0  ;;  %150 = vrot.lane.b32.xlu1 %v6790_v16, %s6654_s0 }
 0x182   :  { %158 = vxpose.xlu1.b32.start.end [1/1] (short) (narrow) %v147_v17, 8 }
 0x1c7   :  { %v149_v18 = vpop.permute.xlu0 %148 }
 0x1c8   :  { %190 = vxpose.xlu0.b32.start.end [1/1] (short) (narrow) %v149_v18, 8 }
 0x1cb   :  { %v151_v19 = vpop.permute.xlu1 %150  ;;  %v153_v20 = vpop.permute.xlu0 %152 }
 0x1cc   :  { %222 = vxpose.xlu0.b32.start.end [1/1] (short) (narrow) %v151_v19, 8 }
 0x1d0   :  { %254 = vxpose.xlu0.b32.start.end [1/1] (short) (narrow) %v153_v20, 8 }
 0x202   :  { %v174_v21 = vpop.trf.xlu1 }
 0x203   :  { %6138 = vmatpush3.msra.mxu1 %v174_v21 }
 0x204   :  { %6140 = vmatmul.mubr.msk.f32.vlgmr.msra.gmra.mrb[0].mxu1 %vm286_vm2, %v6772_v12  ;;  %6142 = vmatprep.subr.mxu1 %v6656_v13 }
 0x205   :  { %6144 = vmatprep.mubr.msk.f32.mxu1 %vm6657_vm1, %v6656_v13 }
 0x248   :  { %v206_v22 = vpop.trf.xlu0 }
 0x249   :  { %6143 = vmatpush3.msra.mxu1 %v206_v22 }
 0x24a   :  { %6145 = vmatmul.mubr.msk.f32.vlgmr.msra.gmra.mrb[2].mxu1 %vm286_vm2, %v6784_v14  ;;  %6147 = vmatprep.subr.mxu1 %v6656_v13 }
 0x24b   :  { %6149 = vmatprep.mubr.msk.f32.mxu1 %vm6657_vm1, %v6656_v13 }
 0x24c   :  { %v238_v23 = vpop.trf.xlu0 }
 0x24d   :  { %6148 = vmatpush3.msra.mxu1 %v238_v23 }
 0x24e   :  { %6150 = vmatmul.mubr.msk.f32.vlgmr.msra.gmra.mrb[4].mxu1 %vm286_vm2, %v6790_v16  ;;  %6157 = vmatprep.subr.mxu1 %v6656_v13 }
 0x24f   :  { %6159 = vmatprep.mubr.msk.f32.mxu1 %vm6657_vm1, %v6656_v13 }
 0x250   :  { %v270_v24 = vpop.trf.xlu0 }
 0x251   :  { %6153 = vmatpush3.msra.mxu0 %v270_v24 }
 0x252   :  { %6155 = vmatmul.mubr.msk.f32.vlgmr.msra.gmra.mrb[2].mxu0 %vm286_vm2, %v6788_v15  ;;  %6162 = vmatprep.subr.mxu0 %v6656_v13 }
 0x253   :  { %6164 = vmatprep.mubr.msk.f32.mxu0 %vm6657_vm1, %v6656_v13 }
 0x2d7   :  { %v355_v25 = vpop.f32.mrb[0].mxu1 }
 0x2d8   :  { %v575_v27 = vmul.f32 0.17677669, %v355_v25  ;;  %v6141_v28 = vpop.f32.mrb[1].mxu1 }
 0x2da   :  { %v584_v29 = vadd.f32 %v5875_v26, %v575_v27 }
 0x2dc   :  { %v588_v30 = vsel %vm286_vm2, %v584_v29, -inf }
 0x2dd   :  { %589 = vmax.xlane.f32.xlu1 %v588_v30 }
 0x2ee   :  { %1360 = vrot.lane.b32.xlu1 %v6770_v11, %s6655_s28 }
 0x31d   :  { %v427_v31 = vpop.f32.mrb[2].mxu1 }
 0x31e   :  { %v576_v32 = vmul.f32 0.17677669, %v427_v31  ;;  %v6146_v33 = vpop.f32.mrb[3].mxu1 }
 0x320   :  { %v585_v34 = vadd.f32 %v5875_v26, %v576_v32 }
 0x321   :  { %v499_v35 = vpop.f32.mrb[4].mxu1 }
 0x322   :  { %v6151_v36 = vpop.f32.mrb[5].mxu1  ;;  %v591_v37 = vsel %vm286_vm2, %v585_v34, -inf  ;;  %v577_v39 = vmul.f32 0.17677669, %v499_v35 }
 0x323   :  { %592 = vmax.xlane.f32.xlu0 %v591_v37 }
 0x324   :  { %v586_v44 = vadd.f32 %v5875_v26, %v577_v39 }
 0x325   :  { %v571_v38 = vpop.f32.mrb[2].mxu0 }
 0x326   :  { %v578_v40 = vmul.f32 0.17677669, %v571_v38  ;;  %v6156_v41 = vpop.f32.mrb[3].mxu0  ;;  %v594_v45 = vsel %vm286_vm2, %v586_v44, -inf }
 0x328   :  { %v587_v42 = vadd.f32 %v5875_v26, %v578_v40 }
 0x32a   :  { %v597_v43 = vsel %vm286_vm2, %v587_v42, -inf }
 0x32b   :  { %598 = vmax.xlane.f32.xlu1 %v597_v43 }
 0x32f   :  { %595 = vmax.xlane.f32.xlu1 %v594_v45 }
 0x339   :  { %1358 = vrot.lane.b32.xlu0 %v6770_v11, %s6653_s27 }
 0x33d   :  { %632 = vrot.lane.b32.xlu0 %v6772_v12, %s6658_s15 }
 0x340   :  { %1362 = vrot.lane.b32.xlu1 %v6770_v11, %s6652_s1 }
 0x341   :  { %636 = vrot.lane.b32.xlu0 %v6790_v16, %s6658_s15 }
 0x344   :  { %634 = vrot.lane.b32.xlu1 %v6784_v14, %s6658_s15 }
 0x345   :  { %1364 = vrot.lane.b32.xlu0 %v6770_v11, %s6654_s0 }
 0x348   :  { %638 = vrot.lane.b32.xlu1 %v6788_v15, %s6658_s15 }
 0x36a   :  { %v590_v46 = vpop.xlane.xlu1 %589 }
 0x36b   :  { %v600_v48 = vsub.f32 %v584_v29, %v590_v46 }
 0x36d   :  { %v604_v49 = vmul.f32 1.442695, %v600_v48 }
 0x36e   :  { %v6843_v47 = vpop.permute.xlu1 %1360 }
 0x36f   :  { %1368 = vrot.lane.b32.xlu0 %v6843_v47, %s6654_s0  ;;  %6548 = vpow2.f32 %v604_v49 }
 0x379   :  { %v6549_v50 = vpop.eup %6548 }
 0x37a   :  { %v612_v51 = vsel %vm286_vm2, %v6549_v50, 0.0 }
 0x38e   :  { %613 = vadd.xlane.f32.xlu0 %v612_v51 }
 0x3b0   :  { %v593_v52 = vpop.xlane.xlu0 %592 }
 0x3b1   :  { %v601_v61 = vsub.f32 %v585_v34, %v593_v52 }
 0x3b3   :  { %v606_v62 = vmul.f32 1.442695, %v601_v61 }
 0x3b4   :  { %v6848_v53 = vpop.permute.xlu0 %1358 }
 0x3b5   :  { %1366 = vrot.lane.b32.xlu1 %v6848_v53, %s6654_s0 }
 0x3b8   :  { %v599_v54 = vpop.xlane.xlu1 %598  ;;  %v633_v5 = vpop.permute.xlu0 %632 }
 0x3b9   :  { %v603_v63 = vsub.f32 %v587_v42, %v599_v54  ;;  %v5890_v42 = vld [vmem:[%s7463_s2 + $0x1] ss:$0 sm:$0xff] }
 0x3bb   :  { %v610_v0 = vmul.f32 1.442695, %v603_v63 }
 0x3bc   :  { %v596_v55 = vpop.xlane.xlu1 %595  ;;  %v637_v7 = vpop.permute.xlu0 %636 }
 0x3bd   :  { %v602_v56 = vsub.f32 %v586_v44, %v596_v55 }
 0x3bf   :  { %v608_v57 = vmul.f32 1.442695, %v602_v56 }
 0x3c0   :  { %v6852_v58 = vpop.permute.xlu1 %1362  ;;  %v1365_v12 = vpop.permute.xlu0 %1364 }
 0x3c1   :  { %6550 = vpow2.f32 %v608_v57  ;;  %1370 = vrot.lane.b32.xlu1 %v6852_v58, %s6654_s0 }
 0x3c2   :  { %6552 = vpow2.f32 %v606_v62 }
 0x3c3   :  { %6554 = vpow2.f32 %v610_v0 }
 0x3c4   :  { %v635_v6 = vpop.permute.xlu1 %634 }
 0x3c8   :  { %v639_v9 = vpop.permute.xlu1 %638 }
 0x3cb   :  { %v6551_v59 = vpop.eup %6550 }
 0x3cc   :  { %v618_v60 = vsel %vm286_vm2, %v6551_v59, 0.0  ;;  %v6553_v1 = vpop.eup %6552 }
 0x3cd   :  { %619 = vadd.xlane.f32.xlu0 %v618_v60  ;;  %v615_v2 = vsel %vm286_vm2, %v6553_v1, 0.0  ;;  %v6555_v3 = vpop.eup %6554 }
 0x3ce   :  { %v621_v4 = vsel %vm286_vm2, %v6555_v3, 0.0 }
 0x3e1   :  { %v1369_v14 = vpop.permute.xlu0 %1368 }
 0x3e5   :  { %616 = vadd.xlane.f32.xlu1 %v615_v2 }
 0x3e9   :  { %622 = vadd.xlane.f32.xlu1 %v621_v4 }
 0x3fa   :  { %644 = vxpose.xlu0.b32.start.end [1/1] (short) (narrow) %v633_v5, 8 }
 0x3fe   :  { %708 = vxpose.xlu0.b32.start.end [1/1] (short) (narrow) %v637_v7, 8 }
 0x402   :  { %740 = vxpose.xlu0.b32.start.end [1/1] (short) (narrow) %v639_v9, 8 }
 0x406   :  { %1376 = vxpose.xlu0.b32.start.end [1/1] (short) (narrow) %v1365_v12, 8 }
 0x40a   :  { %1440 = vxpose.xlu0.b32.start.end [1/1] (short) (narrow) %v1369_v14, 8 }
 0x41b   :  { %v614_v15 = vpop.xlane.xlu0 %613 }
 0x41c   :  { %6556 = vrcp.f32 %v614_v15  ;;  %676 = vxpose.xlu1.b32.start.end [1/1] (short) (narrow) %v635_v6, 8 }
 0x426   :  { %v6557_v16 = vpop.eup %6556 }
 0x427   :  { %v1367_v17 = vpop.permute.xlu1 %1366  ;;  %v628_v18 = vmul.f32 %v6557_v16, %v6549_v50 }
 0x428   :  { %1408 = vxpose.xlu1.b32.start.end [1/1] (short) (narrow) %v1367_v17, 8 }
 0x429   :  { %6158 = vmatpush3.xpose.msk.msra.mxu1 %vm286_vm2, %v628_v18 }
 0x42a   :  { %6167 = vmatprep.subr.mxu1 %v6656_v13 }
 0x433   :  { %v1371_v19 = vpop.permute.xlu1 %1370 }
 0x434   :  { %1472 = vxpose.xlu1.b32.start.end [1/1] (short) (narrow) %v1371_v19, 8 }
 0x45a   :  { %v620_v20 = vpop.xlane.xlu0 %619 }
 0x45b   :  { %6558 = vrcp.f32 %v620_v20 }
 0x465   :  { %v6559_v22 = vpop.eup %6558 }
 0x466   :  { %v630_v24 = vmul.f32 %v6559_v22, %v6551_v59 }
 0x472   :  { %v617_v21 = vpop.xlane.xlu1 %616 }
 0x473   :  { %6560 = vrcp.f32 %v617_v21 }
 0x476   :  { %v623_v31 = vpop.xlane.xlu1 %622 }
 0x477   :  { %6562 = vrcp.f32 %v623_v31 }
 0x47a   :  { %v660_v23 = vpop.trf.xlu0 }
 0x47b   :  { %6160 = vmatmul.mubr.msk.f32.vlgmr.msra.gmra.mrb[6].mxu1 %vm286_vm2, %v660_v23 }
 0x47c   :  { %6168 = vmatpush3.xpose.msk.msra.mxu1 %vm286_vm2, %v630_v24  ;;  %6169 = vmatprep.mubr.msk.f32.mxu1 %vm6657_vm1, %v6656_v13 }
 0x47d   :  { %v6561_v25 = vpop.eup %6560  ;;  %6177 = vmatprep.subr.mxu1 %v6656_v13 }
 0x47e   :  { %v724_v26 = vpop.trf.xlu0  ;;  %v629_v27 = vmul.f32 %v6561_v25, %v6553_v1 }
 0x47f   :  { %6170 = vmatmul.mubr.msk.f32.vlgmr.msra.gmra.mrb[8].mxu1 %vm286_vm2, %v724_v26 }
 0x480   :  { %6163 = vmatpush3.xpose.msk.msra.mxu0 %vm286_vm2, %v629_v27  ;;  %6179 = vmatprep.mubr.msk.f32.mxu1 %vm6657_vm1, %v6656_v13 }
 0x481   :  { %6172 = vmatprep.subr.mxu0 %v6656_v13  ;;  %v6563_v32 = vpop.eup %6562 }
 0x482   :  { %v756_v28 = vpop.trf.xlu0  ;;  %v631_v34 = vmul.f32 %v6563_v32, %v6555_v3 }
 0x486   :  { %v1392_v29 = vpop.trf.xlu0 }
 0x487   :  { %6178 = vmatpush3.msra.mxu1 %v1392_v29 }
 0x488   :  { %6180 = vmatmul.mubr.msk.f32.vlgmr.msra.gmra.mrb[10].mxu1 %vm286_vm2, %v6770_v11  ;;  %6187 = vmatprep.subr.mxu1 %v6656_v13 }
 0x489   :  { %6189 = vmatprep.mubr.msk.f32.mxu1 %vm6657_vm1, %v6656_v13 }
 0x48a   :  { %v1456_v30 = vpop.trf.xlu0 }
 0x48b   :  { %6188 = vmatpush3.msra.mxu1 %v1456_v30 }
 0x48c   :  { %6190 = vmatmul.mubr.msk.f32.vlgmr.msra.gmra.mrb[12].mxu1 %vm286_vm2, %v6843_v47  ;;  %6197 = vmatprep.subr.mxu1 %v6656_v13 }
 0x48d   :  { %6199 = vmatprep.mubr.msk.f32.mxu1 %vm6657_vm1, %v6656_v13 }
 0x49c   :  { %v692_v33 = vpop.trf.xlu1 }
 0x49d   :  { %6165 = vmatmul.mubr.msk.f32.vlgmr.msra.gmra.mrb[4].mxu0 %vm286_vm2, %v692_v33 }
 0x49e   :  { %6173 = vmatpush3.xpose.msk.msra.mxu0 %vm286_vm2, %v631_v34  ;;  %6174 = vmatprep.mubr.msk.f32.mxu0 %vm6657_vm1, %v6656_v13 }
 0x49f   :  { %6182 = vmatprep.subr.mxu0 %v6656_v13 }
 0x4a1   :  { %6175 = vmatmul.mubr.msk.f32.vlgmr.msra.gmra.mrb[6].mxu0 %vm286_vm2, %v756_v28 }
 0x4a2   :  { %6184 = vmatprep.mubr.msk.f32.mxu0 %vm6657_vm1, %v6656_v13 }
 0x4a8   :  { %v1424_v35 = vpop.trf.xlu1 }
 0x4a9   :  { %6183 = vmatpush3.msra.mxu0 %v1424_v35 }
 0x4aa   :  { %6185 = vmatmul.mubr.msk.f32.vlgmr.msra.gmra.mrb[8].mxu0 %vm286_vm2, %v6848_v53  ;;  %6192 = vmatprep.subr.mxu0 %v6656_v13 }
 0x4ab   :  { %6194 = vmatprep.mubr.msk.f32.mxu0 %vm6657_vm1, %v6656_v13 }
 0x4b4   :  { %v1488_v36 = vpop.trf.xlu1 }
 0x4b5   :  { %6193 = vmatpush3.msra.mxu0 %v1488_v36 }
 0x4b6   :  { %6195 = vmatmul.mubr.msk.f32.vlgmr.msra.gmra.mrb[10].mxu0 %vm286_vm2, %v6852_v58  ;;  %6202 = vmatprep.subr.mxu0 %v6656_v13 }
 0x4b7   :  { %6204 = vmatprep.mubr.msk.f32.mxu0 %vm6657_vm1, %v6656_v13 }
 0x54e   :  { %v6899_v37 = vpop.f32.mrb[6].mxu1 }
 0x54f   :  { %v6161_v38 = vpop.f32.mrb[7].mxu1 }
 0x552   :  { %v6901_v39 = vpop.f32.mrb[8].mxu1 }
 0x553   :  { %v6171_v40 = vpop.f32.mrb[9].mxu1 }
 0x55b   :  { %v1572_v41 = vpop.f32.mrb[10].mxu1 }
 0x55c   :  { %v1792_v43 = vmul.f32 0.17677669, %v1572_v41  ;;  %v6181_v44 = vpop.f32.mrb[11].mxu1 }
 0x55e   :  { %v1801_v45 = vadd.f32 %v5890_v42, %v1792_v43 }
 0x55f   :  { %v1716_v46 = vpop.f32.mrb[12].mxu1 }
 0x560   :  { %v6191_v48 = vpop.f32.mrb[13].mxu1  ;;  %v1805_v49 = vsel %vm286_vm2, %v1801_v45, -inf  ;;  %v1794_v56 = vmul.f32 0.17677669, %v1716_v46 }
 0x561   :  { %1806 = vmax.xlane.f32.xlu0 %v1805_v49  ;;  %v6659_v48 = vmov 1983009808  }
 0x562   :  { %v1803_v62 = vadd.f32 %v5890_v42, %v1794_v56  ;;  %v1207_v49 = vunpack.c.l.s4 %v6659_v48 }
 0x564   :  { %v1811_v63 = vsel %vm286_vm2, %v1803_v62, -inf }
 0x570   :  { %v920_v50 = vpop.f32.mrb[4].mxu0 }
 0x571   :  { %v6166_v51 = vpop.f32.mrb[5].mxu0 }
 0x574   :  { %v1072_v52 = vpop.f32.mrb[6].mxu0 }
 0x575   :  { %v6176_v54 = vpop.f32.mrb[7].mxu0 }
 0x57d   :  { %v1644_v55 = vpop.f32.mrb[8].mxu0 }
 0x57e   :  { %v1793_v57 = vmul.f32 0.17677669, %v1644_v55  ;;  %v6186_v59 = vpop.f32.mrb[9].mxu0 }
 0x580   :  { %v1802_v60 = vadd.f32 %v5890_v42, %v1793_v57 }
 0x582   :  { %v1808_v61 = vsel %vm286_vm2, %v1802_v60, -inf }
 0x583   :  { %1809 = vmax.xlane.f32.xlu1 %v1808_v61 }
 0x587   :  { %1812 = vmax.xlane.f32.xlu1 %v1811_v63 }
 0x589   :  { %v1788_v0 = vpop.f32.mrb[10].mxu0 }
 0x58a   :  { %v1795_v1 = vmul.f32 0.17677669, %v1788_v0  ;;  %v6196_v2 = vpop.f32.mrb[11].mxu0 }
 0x58c   :  { %v1804_v3 = vadd.f32 %v5890_v42, %v1795_v1 }
 0x58e   :  { %v1814_v4 = vsel %vm286_vm2, %v1804_v3, -inf }
 0x58f   :  { %1815 = vmax.xlane.f32.xlu0 %v1814_v4 }
 0x598   :  { %1849 = vrot.lane.b32.xlu1 %v6770_v11, %s6658_s15 }
 0x59c   :  { %1853 = vrot.lane.b32.xlu1 %v6843_v47, %s6658_s15 }
 0x5a0   :  { %1855 = vrot.lane.b32.xlu1 %v6852_v58, %s6658_s15 }
 0x5a5   :  { %1851 = vrot.lane.b32.xlu0 %v6848_v53, %s6658_s15 }
 0x5ee   :  { %v1807_v5 = vpop.xlane.xlu0 %1806 }
 0x5ef   :  { %v1817_v6 = vsub.f32 %v1801_v45, %v1807_v5 }
 0x5f1   :  { %v1821_v7 = vmul.f32 1.442695, %v1817_v6 }
 0x5f3   :  { %6564 = vpow2.f32 %v1821_v7 }
 0x5fd   :  { %v6565_v9 = vpop.eup %6564 }
 0x5fe   :  { %v1829_v12 = vsel %vm286_vm2, %v6565_v9, 0.0 }
 0x5ff   :  { %1830 = vadd.xlane.f32.xlu0 %v1829_v12 }
 0x610   :  { %v1810_v14 = vpop.xlane.xlu1 %1809 }
 0x611   :  { %v1818_v15 = vsub.f32 %v1802_v60, %v1810_v14  ;;  %v6660_v60 = vmov 1934713408  }
 0x612   :  { %v1239_v61 = vunpack.c.l.s4 %v6660_v60 }
 0x613   :  { %v1823_v11 = vmul.f32 1.442695, %v1818_v15 }
 0x614   :  { %v1813_v16 = vpop.xlane.xlu1 %1812  ;;  %v1240_v4 = vunpack.c.0.s8 %v1239_v61 }
 0x615   :  { %6566 = vpow2.f32 %v1823_v11  ;;  %v1819_v47 = vsub.f32 %v1803_v62, %v1813_v16 }
 0x617   :  { %v1825_v17 = vmul.f32 1.442695, %v1819_v47 }
 0x618   :  { %v1850_v25 = vpop.permute.xlu1 %1849 }
 0x619   :  { %6568 = vpow2.f32 %v1825_v17 }
 0x61c   :  { %v1816_v58 = vpop.xlane.xlu0 %1815  ;;  %v1854_v26 = vpop.permute.xlu1 %1853 }
 0x61d   :  { %v1820_v18 = vsub.f32 %v1804_v3, %v1816_v58 }
 0x61f   :  { %v6567_v19 = vpop.eup %6566  ;;  %v1827_v53 = vmul.f32 1.442695, %v1820_v18 }
 0x620   :  { %v1832_v20 = vsel %vm286_vm2, %v6567_v19, 0.0  ;;  %v1856_v27 = vpop.permute.xlu1 %1855  ;;  %v1852_v28 = vpop.permute.xlu0 %1851 }
 0x621   :  { %6570 = vpow2.f32 %v1827_v53  ;;  %1833 = vadd.xlane.f32.xlu1 %v1832_v20 }
 0x623   :  { %v6569_v21 = vpop.eup %6568 }
 0x624   :  { %v1835_v22 = vsel %vm286_vm2, %v6569_v21, 0.0 }
 0x625   :  { %1836 = vadd.xlane.f32.xlu0 %v1835_v22 }
 0x62b   :  { %v6571_v23 = vpop.eup %6570 }
 0x62c   :  { %v1838_v24 = vsel %vm286_vm2, %v6571_v23, 0.0 }
 0x62d   :  { %1839 = vadd.xlane.f32.xlu0 %v1838_v24 }
 0x654   :  { %1861 = vxpose.xlu1.b32.start.end [1/1] (short) (narrow) %v1850_v25, 8 }
 0x658   :  { %1957 = vxpose.xlu1.b32.start.end [1/1] (short) (narrow) %v1856_v27, 8 }
 0x65a   :  { %1893 = vxpose.xlu0.b32.start.end [1/1] (short) (narrow) %v1852_v28, 8 }
 0x65c   :  { %1108 = vxpose.xlu1.b32.start.end [1/1] (short) (narrow) %v920_v50, 8  ;;  %v1209_v50 = vlaneseq }
 0x65e   :  { %1925 = vxpose.xlu0.b32.start.end [1/1] (short) (narrow) %v1854_v26, 8  ;;  %v1210_v54 = vshrl.u32 %v1209_v50, 7 }
 0x660   :  { %1172 = vxpose.xlu1.b32.start.end [1/1] (short) (narrow) %v1072_v52, 8  ;;  %v1208_v52 = vunpack.c.0.s8 %v1207_v49  ;;  %v6944_v16 = vsub.s32 %v1240_v4, %v1210_v54 }
 0x662   :  { %1076 = vxpose.xlu0.b32.start.end [1/1] (short) (narrow) %v6899_v37, 8  ;;  %v6938_v59 = vsub.s32 %v1208_v52, %v1210_v54 }
 0x666   :  { %1140 = vxpose.xlu0.b32.start.end [1/1] (short) (narrow) %v6901_v39, 8 }
 0x68c   :  { %v1831_v29 = vpop.xlane.xlu0 %1830 }
 0x68d   :  { %6572 = vrcp.f32 %v1831_v29 }
 0x697   :  { %v6573_v30 = vpop.eup %6572 }
 0x698   :  { %v1845_v31 = vmul.f32 %v6573_v30, %v6565_v9 }
 0x69a   :  { %6198 = vmatpush3.xpose.msk.msra.mxu1 %vm286_vm2, %v1845_v31 }
 0x69b   :  { %6207 = vmatprep.subr.mxu1 %v6656_v13 }
 0x6ae   :  { %v1834_v32 = vpop.xlane.xlu1 %1833 }
 0x6af   :  { %6574 = vrcp.f32 %v1834_v32 }
 0x6b2   :  { %v1837_v35 = vpop.xlane.xlu0 %1836 }
 0x6b3   :  { %6576 = vrcp.f32 %v1837_v35 }
 0x6b9   :  { %v6575_v33 = vpop.eup %6574 }
 0x6ba   :  { %v1846_v34 = vmul.f32 %v6575_v33, %v6567_v19  ;;  %v1840_v36 = vpop.xlane.xlu0 %1839 }
 0x6bb   :  { %6578 = vrcp.f32 %v1840_v36 }
 0x6bc   :  { %6203 = vmatpush3.xpose.msk.msra.mxu0 %vm286_vm2, %v1846_v34 }
 0x6bd   :  { %6212 = vmatprep.subr.mxu0 %v6656_v13  ;;  %v6577_v37 = vpop.eup %6576 }
 0x6be   :  { %v1847_v39 = vmul.f32 %v6577_v37, %v6569_v21 }
 0x6c5   :  { %v6579_v40 = vpop.eup %6578 }
 0x6c6   :  { %v1848_v42 = vmul.f32 %v6579_v40, %v6571_v23 }
 0x6d4   :  { %v1877_v38 = vpop.trf.xlu1 }
 0x6d5   :  { %6200 = vmatmul.mubr.msk.f32.vlgmr.msra.gmra.mrb[14].mxu1 %vm286_vm2, %v1877_v38  ;;  %v2572_v38 = vld [vmem:[%s7465_s4] sm:$0xff] }
 0x6d6   :  { %6208 = vmatpush3.xpose.msk.msra.mxu1 %vm286_vm2, %v1847_v39  ;;  %6209 = vmatprep.mubr.msk.f32.mxu1 %vm6657_vm1, %v6656_v13  ;;  %v2573_v39 = vld [vmem:[%s7465_s4 + $0x8] sm:$0xff] }
 0x6d7   :  { %v6430_v40 = vpack.c.bf16 %v2573_v39, %v2572_v38 }
 0x6d8   :  { %v1973_v43 = vpop.trf.xlu1 }
 0x6da   :  { %v1909_v41 = vpop.trf.xlu0 }
 0x6db   :  { %6205 = vmatmul.mubr.msk.f32.vlgmr.msra.gmra.mrb[12].mxu0 %vm286_vm2, %v1909_v41 }
 0x6dc   :  { %6213 = vmatpush3.xpose.msk.msra.mxu0 %vm286_vm2, %v1848_v42  ;;  %6214 = vmatprep.mubr.msk.f32.mxu0 %vm6657_vm1, %v6656_v13  ;;  %v1124_v45 = vpop.trf.xlu1 }
 0x6dd   :  { %6431 = vmatprep.subr.bf16.mxu0 %v6430_v40 }
 0x6de   :  { %v1941_v44 = vpop.trf.xlu0 }
 0x6df   :  { %6210 = vmatmul.mubr.msk.f32.vlgmr.msra.gmra.mrb[16].mxu1 %vm286_vm2, %v1941_v44  ;;  %6215 = vmatmul.mubr.msk.f32.vlgmr.msra.gmra.mrb[14].mxu0 %vm286_vm2, %v1973_v43 }
 0x6e0   :  { %v1188_v56 = vpop.trf.xlu1  ;;  %6433 = vmatpush3.bf16.msra.mxu0 %v6430_v40 }
 0x6e1   :  { %v1220_v62 = vcombine.low %v1124_v45, %v1188_v56  ;;  %v1221_v63 = vcombine.high %v1124_v45, %v1188_v56 }
 0x6e2   :  { %v1092_v46 = vpop.trf.xlu0 }
 0x6e3   :  { %v1228_v5 = vrot.slane %v1220_v62, %v6938_v59  ;;  %v1235_v6 = vrot.slane %v1221_v63, %v6938_v59 }
 0x6e6   :  { %v1156_v57 = vpop.trf.xlu0 }
 0x6e7   :  { %v1204_v0 = vcombine.low %v1092_v46, %v1156_v57  ;;  %v1205_v1 = vcombine.high %v1092_v46, %v1156_v57 }
 0x6e9   :  { %v1212_v7 = vrot.slane %v1204_v0, %v6938_v59  ;;  %v1219_v9 = vrot.slane %v1205_v1, %v6938_v59  ;;  %v2574_v0 = vld [vmem:[%s7465_s4 + $0x10] sm:$0xff]  ;;  %v2575_v1 = vld [vmem:[%s7465_s4 + $0x18] sm:$0xff] }
 0x6eb   :  { %v1236_v47 = vcombine.low %v1212_v7, %v1228_v5  ;;  %v1237_v17 = vcombine.high %v1212_v7, %v1228_v5  ;;  %v1252_v58 = vcombine.low %v1219_v9, %v1235_v6  ;;  %v1253_v18 = vcombine.high %v1219_v9, %v1235_v6 }
 0x6ed   :  { %v1244_v19 = vrot.slane %v1236_v47, %v6944_v16  ;;  %v1251_v53 = vrot.slane %v1237_v17, %v6944_v16  ;;  %v1260_v20 = vrot.slane %v1252_v58, %v6944_v16  ;;  %v1267_v21 = vrot.slane %v1253_v18, %v6944_v16 }
 0x6ef   :  { %v1272_v22 = vcombine.low %v1244_v19, %v1251_v53  ;;  %v5884_v23 = vcombine.high %v1244_v19, %v1251_v53  ;;  %v1288_v24 = vcombine.low %v1260_v20, %v1267_v21  ;;  %v5885_v25 = vcombine.high %v1260_v20, %v1267_v21 }
 0x6f1   :  { %v1279_v26 = vrot.slane %v1272_v22, %v6938_v59  ;;  %v1287_v27 = vrot.slane %v5884_v23, %v6938_v59  ;;  %v1295_v28 = vrot.slane %v1288_v24, %v6938_v59  ;;  %v1303_v29 = vrot.slane %v5885_v25, %v6938_v59 }
 0x6f3   :  { %v1305_v30 = vcombine.high %v1279_v26, %v1287_v27  ;;  %v1321_v31 = vcombine.high %v1295_v28, %v1303_v29  ;;  %v1304_v35 = vcombine.low %v1279_v26, %v1287_v27  ;;  %v1320_v36 = vcombine.low %v1295_v28, %v1303_v29 }
 0x6f5   :  { %v1319_v32 = vrot.slane %v1305_v30, %v6944_v16  ;;  %v1335_v33 = vrot.slane %v1321_v31, %v6944_v16  ;;  %v6964_v41 = vrot.slane %v1304_v35, %v6944_v16  ;;  %v6967_v42 = vrot.slane %v1320_v36, %v6944_v16 }
 0x6f7   :  { %v1338_v34 = vcombine.low %v1319_v32, %v1335_v33  ;;  %v1339_v37 = vcombine.high %v1319_v32, %v1335_v33  ;;  %v1337_v43 = vcombine.high %v6964_v41, %v6967_v42  ;;  %v1336_v29 = vcombine.low %v6964_v41, %v6967_v42  ;;  %v5901_v41 = vld [vmem:[%s7466_s5] ss:$0 sm:$0xff] }
 0x7a8   :  { %v2061_v51 = vpop.f32.mrb[14].mxu1 }
 0x7a9   :  { %v6201_v55 = vpop.f32.mrb[15].mxu1  ;;  %2293 = vxpose.xlu0.b32.start.end [1/1] (short) (narrow) %v2061_v51, 8 }
 0x7ae   :  { %v2137_v2 = vpop.f32.mrb[12].mxu0 }
 0x7af   :  { %2325 = vxpose.xlu1.b32.start.end [1/1] (short) (narrow) %v2137_v2, 8  ;;  %v6206_v3 = vpop.f32.mrb[13].mxu0  ;;  %v6434_v2 = vpack.c.bf16 %v2575_v1, %v2574_v0  ;;  %v2713_v1 = vld [vmem:[%s7471_s10 + $0x10] sm:$0xff] }
 0x7b1   :  { %6435 = vmatprep.subr.bf16.mxu0 %v6434_v2 }
 0x7b2   :  { %v2213_v12 = vpop.f32.mrb[16].mxu1  ;;  %v2289_v14 = vpop.f32.mrb[14].mxu0  ;;  %6437 = vmatpush3.bf16.msra.mxu0 %v6434_v2  ;;  %v2714_v2 = vld [vmem:[%s7471_s10 + $0x18] sm:$0xff] }
 0x7b3   :  { %2389 = vxpose.xlu1.b32.start.end [1/1] (short) (narrow) %v2289_v14, 8  ;;  %v6216_v15 = vpop.f32.mrb[15].mxu0  ;;  %2357 = vxpose.xlu0.b32.start.end [1/1] (short) (narrow) %v2213_v12, 8  ;;  %v6211_v11 = vpop.f32.mrb[17].mxu1 }
 0x7d1   :  { %1345 = vrot.lane.b32.xlu1 %v1338_v34, %s6661_s18 }
 0x7d5   :  { %1349 = vrot.lane.b32.xlu1 %v1339_v37, %s6662_s23 }
 0x7dc   :  { %1341 = vrot.lane.b32.xlu0 %v1337_v43, %s6663_s24 }
 0x829   :  { %v2309_v44 = vpop.trf.xlu0 }
 0x82f   :  { %v2341_v45 = vpop.trf.xlu1 }
 0x833   :  { %v2405_v46 = vpop.trf.xlu1  ;;  %v2373_v48 = vpop.trf.xlu0 }
 0x834   :  { %v2437_v49 = vcombine.low %v2341_v45, %v2405_v46  ;;  %v2438_v50 = vcombine.high %v2341_v45, %v2405_v46  ;;  %v2421_v51 = vcombine.low %v2309_v44, %v2373_v48  ;;  %v2422_v52 = vcombine.high %v2309_v44, %v2373_v48 }
 0x836   :  { %v2445_v54 = vrot.slane %v2437_v49, %v6938_v59  ;;  %v2452_v55 = vrot.slane %v2438_v50, %v6938_v59  ;;  %v2429_v56 = vrot.slane %v2421_v51, %v6938_v59  ;;  %v2436_v57 = vrot.slane %v2422_v52, %v6938_v59 }
 0x838   :  { %v2453_v60 = vcombine.low %v2429_v56, %v2445_v54  ;;  %v2454_v61 = vcombine.high %v2429_v56, %v2445_v54  ;;  %v2469_v62 = vcombine.low %v2436_v57, %v2452_v55  ;;  %v2470_v63 = vcombine.high %v2436_v57, %v2452_v55 }
 0x83a   :  { %v2461_v3 = vrot.slane %v2453_v60, %v6944_v16  ;;  %v2468_v4 = vrot.slane %v2454_v61, %v6944_v16  ;;  %v2477_v5 = vrot.slane %v2469_v62, %v6944_v16  ;;  %v2484_v6 = vrot.slane %v2470_v63, %v6944_v16  ;;  %v2711_v62 = vld [vmem:[%s7471_s10] sm:$0xff]  ;;  %v2712_v63 = vld [vmem:[%s7471_s10 + $0x8] sm:$0xff] }
 0x83b   :  { %v6438_v0 = vpack.c.bf16 %v2712_v63, %v2711_v62 }
 0x83c   :  { %v2489_v7 = vcombine.low %v2461_v3, %v2468_v4  ;;  %v5899_v9 = vcombine.high %v2461_v3, %v2468_v4  ;;  %v2505_v12 = vcombine.low %v2477_v5, %v2484_v6  ;;  %v5900_v14 = vcombine.high %v2477_v5, %v2484_v6  ;;  %v2805_v4 = vld [vmem:[%s7473_s12] sm:$0xff]  ;;  %v2806_v5 = vld [vmem:[%s7473_s12 + $0x8] sm:$0xff]  ;;  %v2807_v6 = vld [vmem:[%s7473_s12 + $0x10] sm:$0xff] }
 0x83d   :  { %6439 = vmatprep.subr.bf16.mxu0 %v6438_v0  ;;  %v6442_v3 = vpack.c.bf16 %v2714_v2, %v2713_v1 }
 0x83e   :  { %v2496_v15 = vrot.slane %v2489_v7, %v6938_v59  ;;  %v2504_v11 = vrot.slane %v5899_v9, %v6938_v59  ;;  %v2512_v47 = vrot.slane %v2505_v12, %v6938_v59  ;;  %v2520_v17 = vrot.slane %v5900_v14, %v6938_v59  ;;  %v2808_v9 = vld [vmem:[%s7473_s12 + $0x18] sm:$0xff]  ;;  %v2809_v14 = vld [vmem:[%s7473_s12 + $0x20] sm:$0xff] }
 0x83f   :  { %v6446_v7 = vpack.c.bf16 %v2806_v5, %v2805_v4  ;;  %v6450_v12 = vpack.c.bf16 %v2808_v9, %v2807_v6 }
 0x840   :  { %v2522_v58 = vcombine.high %v2496_v15, %v2504_v11  ;;  %v2538_v18 = vcombine.high %v2512_v47, %v2520_v17  ;;  %v2521_v19 = vcombine.low %v2496_v15, %v2504_v11  ;;  %v2537_v53 = vcombine.low %v2512_v47, %v2520_v17  ;;  %v2810_v15 = vld [vmem:[%s7473_s12 + $0x28] sm:$0xff]  ;;  %v2811_v47 = vld [vmem:[%s7473_s12 + $0x30] sm:$0xff]  ;;  %v2812_v17 = vld [vmem:[%s7473_s12 + $0x38] sm:$0xff] }
 0x841   :  { %6447 = vmatprep.subr.bf16.mxu1 %v6446_v7  ;;  %v6454_v11 = vpack.c.bf16 %v2810_v15, %v2809_v14  ;;  %v5913_v14 = vld [vmem:[%s7464_s3 + $0x28] sm:$0xff] }
 0x842   :  { %v2536_v20 = vrot.slane %v2522_v58, %v6944_v16  ;;  %v2552_v21 = vrot.slane %v2538_v18, %v6944_v16  ;;  %v2529_v22 = vrot.slane %v2521_v19, %v6944_v16  ;;  %v2545_v23 = vrot.slane %v2537_v53, %v6944_v16  ;;  %6449 = vmatpush3.bf16.msra.mxu1 %v6446_v7  ;;  %v2813_v18 = vld [vmem:[%s7473_s12 + $0x40] sm:$0xff]  ;;  %v2814_v19 = vld [vmem:[%s7473_s12 + $0x48] sm:$0xff] }
 0x843   :  { %v1346_v28 = vpop.permute.xlu1 %1345  ;;  %6451 = vmatprep.subr.bf16.mxu1 %v6450_v12  ;;  %v6458_v58 = vpack.c.bf16 %v2812_v17, %v2811_v47  ;;  %v6462_v53 = vpack.c.bf16 %v2814_v19, %v2813_v18  ;;  %v5915_v47 = vld [vmem:[%s7464_s3 + $0x38] sm:$0xff] }
 0x844   :  { %v2555_v24 = vcombine.low %v2536_v20, %v2552_v21  ;;  %v2554_v25 = vcombine.high %v2529_v22, %v2545_v23  ;;  %v2553_v26 = vcombine.low %v2529_v22, %v2545_v23  ;;  %v2556_v27 = vcombine.high %v2536_v20, %v2552_v21  ;;  %v2815_v20 = vld [vmem:[%s7473_s12 + $0x50] sm:$0xff]  ;;  %v2816_v21 = vld [vmem:[%s7473_s12 + $0x58] sm:$0xff]  ;;  %v2817_v23 = vld [vmem:[%s7473_s12 + $0x60] sm:$0xff] }
 0x845   :  { %v6466_v22 = vpack.c.bf16 %v2816_v21, %v2815_v20 }
 0x846   :  { %2562 = vrot.lane.b32.xlu0 %v2555_v24, %s6661_s18  ;;  %2558 = vrot.lane.b32.xlu1 %v2554_v25, %s6663_s24  ;;  %v2818_v24 = vld [vmem:[%s7473_s12 + $0x68] sm:$0xff] }
 0x847   :  { %v1350_v31 = vpop.permute.xlu1 %1349  ;;  %6453 = vmatpush3.bf16.msra.mxu1 %v6450_v12  ;;  %v6470_v25 = vpack.c.bf16 %v2818_v24, %v2817_v23  ;;  %v5912_v12 = vld [vmem:[%s7464_s3 + $0x20] sm:$0xff] }
 0x848   :  { %6455 = vmatprep.subr.bf16.mxu1 %v6454_v11  ;;  %v6478_v15 = vpack.c.bf16 %v5913_v14, %v5912_v12  ;;  %v5910_v23 = vld [vmem:[%s7469_s8] ss:$0 sm:$0xff] }
 0x84a   :  { %2566 = vrot.lane.b32.xlu1 %v2556_v27, %s6662_s23 }
 0x84b   :  { %6457 = vmatpush3.bf16.msra.mxu1 %v6454_v11  ;;  %v5914_v11 = vld [vmem:[%s7464_s3 + $0x30] sm:$0xff]  ;;  %s6628_s3 = scalar_lea.vmem %s5859_s30, 256 }
 0x84c   :  { %6459 = vmatprep.subr.bf16.mxu1 %v6458_v58  ;;  %v6482_v17 = vpack.c.bf16 %v5915_v47, %v5914_v11  ;;  %p6629_p0 = scmp.ne.s32.totalorder %s5859_s30, %s6628_s3  ;;  %p6634_p2 = scmp.lt.s32.totalorder %s6628_s3, %s6628_s3 }
 0x84e   :  { %v1342_v30 = vpop.permute.xlu0 %1341  ;;  %p6635_p3 = por %p6634_p2, %p6633_p1 }
 0x84f   :  { %v1352_v32 = vsel %vm286_vm2, %v1336_v29, %v1342_v30  ;;  %6461 = vmatpush3.bf16.msra.mxu1 %v6458_v58 }
 0x850   :  { %v1354_v33 = vsel %vm1353_vm3, %v1352_v32, %v1346_v28  ;;  %6463 = vmatprep.subr.bf16.mxu1 %v6462_v53  ;;  %p6636_p4 = pnand %p6635_p3, %p6629_p0 }
 0x851   :  { %v1356_v34 = vsel %vm1355_vm4, %v1354_v33, %v1350_v31  ;;  %v5904_v33 = vld [vmem:[%s7467_s6] ss:$0 sm:$0xff] }
 0x852   :  { %6225 = vmatprep.mubr.msk.f32.mxu0 %vm57_vm0, %v1356_v34 }
 0x853   :  { %6465 = vmatpush3.bf16.msra.mxu1 %v6462_v53 }
 0x854   :  { %6467 = vmatprep.subr.bf16.mxu1 %v6466_v22 }
 0x857   :  { %6469 = vmatpush3.bf16.msra.mxu1 %v6466_v22 }
 0x858   :  { %6471 = vmatprep.subr.bf16.mxu1 %v6470_v25 }
 0x85b   :  { %6473 = vmatpush3.bf16.msra.mxu1 %v6470_v25 }
 0x8b8   :  { %v2559_v35 = vpop.permute.xlu1 %2558  ;;  %v2563_v37 = vpop.permute.xlu0 %2562 }
 0x8b9   :  { %v2569_v36 = vsel %vm286_vm2, %v2553_v26, %v2559_v35  ;;  %v5905_v35 = vld [vmem:[%s7468_s7] ss:$0 sm:$0xff] }
 0x8ba   :  { %v2570_v38 = vsel %vm1353_vm3, %v2569_v36, %v2563_v37 }
 0x8bc   :  { %v2567_v39 = vpop.permute.xlu1 %2566 }
 0x8bd   :  { %v2571_v40 = vsel %vm1355_vm4, %v2570_v38, %v2567_v39 }
 0x8be   :  { %6226 = vmatmul.mubr.msk.f32.vlgmr.msra.gmra.mrb[16].mxu0 %vm57_vm0, %v2571_v40 }
 0x8bf   :  { %6441 = vmatpush3.bf16.msra.mxu0 %v6438_v0 }
 0x8c0   :  { %6443 = vmatprep.subr.bf16.mxu0 %v6442_v3 }
 0x8c3   :  { %6445 = vmatpush3.bf16.msra.mxu0 %v6442_v3 }
 0x8c4   :  { %6479 = vmatprep.subr.bf16.mxu0 %v6478_v15 }
 0x991   :  { %v6227_v42 = vpop.f32.mrb[16].mxu0 }
 0x992   :  { %v2661_v43 = vadd.f32 %v6227_v42, %v5901_v41  ;;  %v2655_v44 = vpop.f32.mrb[17].mxu0  ;;  %v2819_v42 = vld [vmem:[%s7473_s12 + $0x70] sm:$0xff] }
 0x993   :  { %v2656_v45 = vadd.f32 %v5901_v41, %v2655_v44 }
 0x994   :  { %v2665_v46 = vadd.f32 %v2661_v43, %v6766_v10  ;;  %v2820_v43 = vld [vmem:[%s7473_s12 + $0x78] sm:$0xff] }
 0x995   :  { %v2664_v48 = vadd.f32 %v2656_v45, %v6759_v8  ;;  %v6474_v44 = vpack.c.bf16 %v2820_v43, %v2819_v42  ;;  %v5906_v45 = vld [vmem:[%s7472_s11] ss:$0 sm:$0xff] }
 0x996   :  { %v2671_v49 = vsel %vm57_vm0, %v2665_v46, 0.0 }
 0x997   :  { %2672 = vadd.xlane.f32.xlu1 %v2671_v49  ;;  %v2668_v50 = vsel %vm57_vm0, %v2664_v48, 0.0  ;;  %6475 = vmatprep.subr.bf16.mxu1 %v6474_v44 }
 0x998   :  { %2669 = vadd.xlane.f32.xlu0 %v2668_v50  ;;  %6477 = vmatpush3.bf16.msra.mxu1 %v6474_v44 }
 0x999   :  { %6315 = vmatprep.subr.mxu1 %v6656_v13 }
 0xa24   :  { %v2673_v51 = vpop.xlane.xlu1 %2672 }
 0xa25   :  { %v2676_v52 = vmul.f32 0.03125, %v2673_v51  ;;  %v2670_v54 = vpop.xlane.xlu0 %2669 }
 0xa26   :  { %v2675_v55 = vmul.f32 0.03125, %v2670_v54  ;;  %v5909_v54 = vld [vmem:[%s7474_s13] ss:$0 sm:$0xff] }
 0xa27   :  { %v7015_v56 = vsub.f32 %v2665_v46, %v2676_v52 }
 0xa28   :  { %v2677_v57 = vsub.f32 %v2664_v48, %v2675_v55 }
 0xa29   :  { %v2680_v10 = vmul.f32 %v7015_v56, %v7015_v56 }
 0xa2a   :  { %v2679_v60 = vmul.f32 %v2677_v57, %v2677_v57 }
 0xa2b   :  { %v2684_v8 = vsel %vm57_vm0, %v2680_v10, 0.0 }
 0xa2c   :  { %v2681_v61 = vsel %vm57_vm0, %v2679_v60, 0.0 }
 0xa2d   :  { %2682 = vadd.xlane.f32.xlu0 %v2681_v61 }
 0xa31   :  { %2685 = vadd.xlane.f32.xlu0 %v2684_v8 }
 0xaba   :  { %v2683_v26 = vpop.xlane.xlu0 %2682 }
 0xabb   :  { %v2687_v27 = vmul.f32 0.03125, %v2683_v26 }
 0xabd   :  { %v2689_v28 = vadd.f32 1e-05, %v2687_v27  ;;  %v5911_v27 = vld [vmem:[%s7470_s9] ss:$0 sm:$0xff] }
 0xabe   :  { %v2686_v29 = vpop.xlane.xlu0 %2685 }
 0xabf   :  { %6580 = vrsqrt.f32 %v2689_v28  ;;  %v2688_v30 = vmul.f32 0.03125, %v2686_v29 }
 0xac1   :  { %v2690_v31 = vadd.f32 1e-05, %v2688_v30 }
 0xac3   :  { %6582 = vrsqrt.f32 %v2690_v31 }
 0xac9   :  { %v6581_v32 = vpop.eup %6580 }
 0xaca   :  { %v2693_v34 = vmul.f32 %v6581_v32, %v2677_v57 }
 0xacc   :  { %v2701_v36 = vmul.f32 %v5904_v33, %v2693_v34 }
 0xacd   :  { %v6583_v37 = vpop.eup %6582 }
 0xace   :  { %v2694_v38 = vmul.f32 %v6583_v37, %v7015_v56  ;;  %v2709_v39 = vadd.f32 %v5905_v35, %v2701_v36 }
 0xad0   :  { %v2702_v40 = vmul.f32 %v5904_v33, %v2694_v38  ;;  %6236 = vmatprep.mubr.msk.f32.mxu0 %vm57_vm0, %v2709_v39 }
 0xad2   :  { %v2710_v41 = vadd.f32 %v5905_v35, %v2702_v40 }
 0xad4   :  { %6237 = vmatmul.mubr.msk.f32.vlgmr.msra.gmra.mrb[18].mxu0 %vm57_vm0, %v2710_v41 }
 0xad5   :  { %6481 = vmatpush3.bf16.msra.mxu0 %v6478_v15 }
 0xad6   :  { %6483 = vmatprep.subr.bf16.mxu0 %v6482_v17 }
 0xad9   :  { %6485 = vmatpush3.bf16.msra.mxu0 %v6482_v17 }
 0xada   :  { %6285 = vmatprep.subr.mxu0 %v6656_v13 }
 0xba7   :  { %v6238_v46 = vpop.f32.mrb[18].mxu0 }
 0xba8   :  { %v2800_v48 = vadd.f32 %v6238_v46, %v5906_v45  ;;  %v2794_v49 = vpop.f32.mrb[19].mxu0  ;;  %v5922_v46 = vld [vmem:[%s7463_s2] ss:$0 sm:$0xff] }
 0xba9   :  { %v2795_v50 = vadd.f32 %v5906_v45, %v2794_v49 }
 0xbaa   :  { %v2804_v52 = vmax.f32 %v2800_v48, 0.0 }
 0xbab   :  { %v2803_v51 = vmax.f32 %v2795_v50, 0.0 }
 0xbad   :  { %6271 = vmatprep.mubr.f32.mxu1 %v2803_v51 }
 0xbae   :  { %6272 = vmatmul.mubr.f32.vlgmr.msra.gmra.mrb[18].mxu1 %v2804_v52 }
 0xbaf   :  { %6317 = vmatprep.mubr.msk.f32.mxu1 %vm6657_vm1, %v6656_v13 }
 0xc81   :  { %v6273_v55 = vpop.f32.mrb[18].mxu1 }
 0xc82   :  { %v2900_v56 = vadd.f32 %v6273_v55, %v5909_v54  ;;  %v2894_v57 = vpop.f32.mrb[19].mxu1 }
 0xc83   :  { %v2895_v60 = vadd.f32 %v5909_v54, %v2894_v57 }
 0xc84   :  { %v2904_v61 = vadd.f32 %v2900_v56, %v2710_v41 }
 0xc85   :  { %v2903_v10 = vadd.f32 %v2895_v60, %v2709_v39 }
 0xc86   :  { %v2910_v8 = vsel %vm57_vm0, %v2904_v61, 0.0 }
 0xc87   :  { %2911 = vadd.xlane.f32.xlu0 %v2910_v8  ;;  %v2907_v62 = vsel %vm57_vm0, %v2903_v10, 0.0 }
 0xc88   :  { %2908 = vadd.xlane.f32.xlu1 %v2907_v62 }
 0xd14   :  { %v2912_v63 = vpop.xlane.xlu0 %2911 }
 0xd15   :  { %v2914_v0 = vmul.f32 0.03125, %v2912_v63  ;;  %v2909_v1 = vpop.xlane.xlu1 %2908 }
 0xd16   :  { %v2913_v2 = vmul.f32 0.03125, %v2909_v1 }
 0xd17   :  { %v2916_v3 = vsub.f32 %v2904_v61, %v2914_v0 }
 0xd18   :  { %v2915_v4 = vsub.f32 %v2903_v10, %v2913_v2 }
 0xd19   :  { %v2918_v5 = vmul.f32 %v2916_v3, %v2916_v3 }
 0xd1a   :  { %v2917_v6 = vmul.f32 %v2915_v4, %v2915_v4 }
 0xd1b   :  { %v2922_v7 = vsel %vm57_vm0, %v2918_v5, 0.0 }
 0xd1c   :  { %2923 = vadd.xlane.f32.xlu0 %v2922_v7  ;;  %v2919_v9 = vsel %vm57_vm0, %v2917_v6, 0.0 }
 0xd1d   :  { %2920 = vadd.xlane.f32.xlu1 %v2919_v9 }
 0xda9   :  { %v2924_v58 = vpop.xlane.xlu0 %2923 }
 0xdaa   :  { %v2926_v18 = vmul.f32 0.03125, %v2924_v58  ;;  %v2921_v19 = vpop.xlane.xlu1 %2920 }
 0xdab   :  { %v2925_v53 = vmul.f32 0.03125, %v2921_v19 }
 0xdac   :  { %v2928_v20 = vadd.f32 1e-05, %v2926_v18 }
 0xdad   :  { %v2927_v21 = vadd.f32 1e-05, %v2925_v53 }
 0xdae   :  { %6584 = vrsqrt.f32 %v2928_v20 }
 0xdaf   :  { %6586 = vrsqrt.f32 %v2927_v21 }
 0xdb8   :  { %v6585_v22 = vpop.eup %6584 }
 0xdb9   :  { %v6587_v24 = vpop.eup %6586  ;;  %v2932_v25 = vmul.f32 %v6585_v22, %v2916_v3 }
 0xdba   :  { %v2931_v26 = vmul.f32 %v6587_v24, %v2915_v4 }
 0xdbb   :  { %v2940_v28 = vmul.f32 %v5910_v23, %v2932_v25 }
 0xdbc   :  { %v2939_v29 = vmul.f32 %v5910_v23, %v2931_v26 }
 0xdbd   :  { %v7124_v31 = vadd.f32 %v5911_v27, %v2940_v28 }
 0xdbe   :  { %v7122_v30 = vadd.f32 %v5911_v27, %v2939_v29 }
 0xdc0   :  { %6282 = vmatprep.mubr.msk.f32.mxu0 %vm57_vm0, %v7122_v30 }
 0xdc1   :  { %6283 = vmatmul.mubr.msk.f32.vlgmr.msra.gmra.mrb[20].mxu0 %vm57_vm0, %v7124_v31 }
 0xdc2   :  { %6287 = vmatprep.mubr.msk.f32.mxu0 %vm6657_vm1, %v6656_v13 }
 0xe94   :  { %v7132_v32 = vpop.f32.mrb[20].mxu0 }
 0xe95   :  { %v7134_v33 = vpop.f32.mrb[21].mxu0 }
 0xe96   :  { %3038 = vrot.lane.b32.xlu0 %v7134_v33, %s6655_s28  ;;  %3036 = vrot.lane.b32.xlu1 %v7134_v33, %s6653_s27 }
 0xe9a   :  { %3040 = vrot.lane.b32.xlu1 %v7134_v33, %s6652_s1 }
 0xe9e   :  { %3042 = vrot.lane.b32.xlu1 %v7134_v33, %s6654_s0 }
 0xf08   :  { %v7144_v34 = vpop.permute.xlu0 %3038  ;;  %v3037_v35 = vpop.permute.xlu1 %3036 }
 0xf09   :  { %3046 = vrot.lane.b32.xlu1 %v7144_v34, %s6654_s0  ;;  %3044 = vrot.lane.b32.xlu0 %v3037_v35, %s6654_s0 }
 0xf0c   :  { %v3041_v36 = vpop.permute.xlu1 %3040 }
 0xf0d   :  { %3048 = vrot.lane.b32.xlu0 %v3041_v36, %s6654_s0 }
 0xf10   :  { %v3043_v37 = vpop.permute.xlu1 %3042 }
 0xf32   :  { %3054 = vxpose.xlu1.b32.start.end [1/1] (short) (narrow) %v3043_v37, 8 }
 0xf50   :  { %4253 = vrot.lane.b32.xlu1 %v7132_v32, %s6655_s28 }
 0xf7b   :  { %v3045_v38 = vpop.permute.xlu0 %3044  ;;  %v3047_v39 = vpop.permute.xlu1 %3046 }
 0xf7c   :  { %3086 = vxpose.xlu0.b32.start.end [1/1] (short) (narrow) %v3045_v38, 8 }
 0xf7f   :  { %v3049_v40 = vpop.permute.xlu0 %3048 }
 0xf80   :  { %3118 = vxpose.xlu0.b32.start.end [1/1] (short) (narrow) %v3047_v39, 8 }
 0xf84   :  { %3150 = vxpose.xlu0.b32.start.end [1/1] (short) (narrow) %v3049_v40, 8 }
 0xfad   :  { %4251 = vrot.lane.b32.xlu0 %v7132_v32, %s6653_s27 }
 0xfb2   :  { %v3070_v41 = vpop.trf.xlu1 }
 0xfb3   :  { %6286 = vmatpush3.msra.mxu0 %v3070_v41 }
 0xfb4   :  { %6288 = vmatmul.mubr.msk.f32.vlgmr.msra.gmra.mrb[22].mxu0 %vm286_vm2, %v7134_v33  ;;  %6290 = vmatprep.subr.mxu0 %v6656_v13 }
 0xfb5   :  { %6292 = vmatprep.mubr.msk.f32.mxu0 %vm6657_vm1, %v6656_v13 }
 0xfc2   :  { %v7191_v5 = vpop.permute.xlu1 %4253 }
 0xffc   :  { %v3102_v42 = vpop.trf.xlu0 }
 0xffd   :  { %6291 = vmatpush3.msra.mxu0 %v3102_v42 }
 0xffe   :  { %6293 = vmatmul.mubr.msk.f32.vlgmr.msra.gmra.mrb[24].mxu0 %vm286_vm2, %v3037_v35  ;;  %6295 = vmatprep.subr.mxu0 %v6656_v13 }
 0xfff   :  { %6297 = vmatprep.mubr.msk.f32.mxu0 %vm6657_vm1, %v6656_v13 }
0x1000   :  { %v3134_v43 = vpop.trf.xlu0 }
0x1001   :  { %6296 = vmatpush3.msra.mxu0 %v3134_v43 }
0x1002   :  { %6298 = vmatmul.mubr.msk.f32.vlgmr.msra.gmra.mrb[26].mxu0 %vm286_vm2, %v7144_v34  ;;  %6300 = vmatprep.subr.mxu0 %v6656_v13 }
0x1003   :  { %6302 = vmatprep.mubr.msk.f32.mxu0 %vm6657_vm1, %v6656_v13 }
0x1004   :  { %v3166_v44 = vpop.trf.xlu0 }
0x1005   :  { %6301 = vmatpush3.msra.mxu0 %v3166_v44 }
0x1006   :  { %6303 = vmatmul.mubr.msk.f32.vlgmr.msra.gmra.mrb[28].mxu0 %vm286_vm2, %v3041_v36  ;;  %6305 = vmatprep.subr.mxu0 %v6656_v13 }
0x1007   :  { %6307 = vmatprep.mubr.msk.f32.mxu0 %vm6657_vm1, %v6656_v13 }
0x101f   :  { %v7187_v4 = vpop.permute.xlu0 %4251 }
0x1087   :  { %v3250_v45 = vpop.f32.mrb[22].mxu0 }
0x1088   :  { %v3470_v48 = vmul.f32 0.17677669, %v3250_v45  ;;  %v6289_v49 = vpop.f32.mrb[23].mxu0 }
0x108a   :  { %v3479_v50 = vadd.f32 %v5922_v46, %v3470_v48 }
0x108c   :  { %v3483_v51 = vsel %vm286_vm2, %v3479_v50, -inf }
0x108d   :  { %3484 = vmax.xlane.f32.xlu1 %v3483_v51 }
0x10d1   :  { %v3322_v52 = vpop.f32.mrb[24].mxu0 }
0x10d2   :  { %v3471_v54 = vmul.f32 0.17677669, %v3322_v52  ;;  %v6294_v55 = vpop.f32.mrb[25].mxu0 }
0x10d4   :  { %v3480_v56 = vadd.f32 %v5922_v46, %v3471_v54 }
0x10d5   :  { %v3394_v57 = vpop.f32.mrb[26].mxu0 }
0x10d6   :  { %v3472_v60 = vmul.f32 0.17677669, %v3394_v57  ;;  %v6299_v61 = vpop.f32.mrb[27].mxu0  ;;  %v3486_v10 = vsel %vm286_vm2, %v3480_v56, -inf }
0x10d7   :  { %3487 = vmax.xlane.f32.xlu0 %v3486_v10 }
0x10d8   :  { %v3481_v8 = vadd.f32 %v5922_v46, %v3472_v60 }
0x10d9   :  { %v3466_v62 = vpop.f32.mrb[28].mxu0 }
0x10da   :  { %v3473_v63 = vmul.f32 0.17677669, %v3466_v62  ;;  %v6304_v0 = vpop.f32.mrb[29].mxu0  ;;  %v3489_v1 = vsel %vm286_vm2, %v3481_v8, -inf }
0x10db   :  { %3490 = vmax.xlane.f32.xlu1 %v3489_v1 }
0x10dc   :  { %v3482_v2 = vadd.f32 %v5922_v46, %v3473_v63 }
0x10de   :  { %v3492_v3 = vsel %vm286_vm2, %v3482_v2, -inf }
0x10df   :  { %3493 = vmax.xlane.f32.xlu1 %v3492_v3 }
0x10ed   :  { %3527 = vrot.lane.b32.xlu0 %v7134_v33, %s6658_s15 }
0x10f0   :  { %4255 = vrot.lane.b32.xlu1 %v7132_v32, %s6652_s1 }
0x10f4   :  { %3529 = vrot.lane.b32.xlu1 %v3037_v35, %s6658_s15 }
0x10f8   :  { %3531 = vrot.lane.b32.xlu1 %v7144_v34, %s6658_s15 }
0x10fc   :  { %3533 = vrot.lane.b32.xlu1 %v3041_v36, %s6658_s15 }
0x1100   :  { %4259 = vrot.lane.b32.xlu1 %v7187_v4, %s6654_s0 }
0x111a   :  { %v3485_v6 = vpop.xlane.xlu1 %3484 }
0x111b   :  { %v3495_v21 = vsub.f32 %v3479_v50, %v3485_v6 }
0x111d   :  { %v3499_v22 = vmul.f32 1.442695, %v3495_v21 }
0x1164   :  { %v3488_v7 = vpop.xlane.xlu0 %3487 }
0x1165   :  { %v3496_v11 = vsub.f32 %v3480_v56, %v3488_v7 }
0x1167   :  { %v3501_v47 = vmul.f32 1.442695, %v3496_v11 }
0x1168   :  { %v3528_v9 = vpop.permute.xlu0 %3527  ;;  %v3491_v12 = vpop.xlane.xlu1 %3490 }
0x1169   :  { %3539 = vxpose.xlu0.b32.start.end [1/1] (short) (narrow) %v3528_v9, 8  ;;  %6588 = vpow2.f32 %v3501_v47  ;;  %v3497_v26 = vsub.f32 %v3481_v8, %v3491_v12  ;;  %v5937_v9 = vld [vmem:[%s7463_s2 + $0x1] ss:$0 sm:$0xff] }
0x116b   :  { %v3503_v28 = vmul.f32 1.442695, %v3497_v26 }
0x116c   :  { %v3494_v14 = vpop.xlane.xlu1 %3493 }
0x116d   :  { %v3498_v17 = vsub.f32 %v3482_v2, %v3494_v14 }
0x116f   :  { %v3505_v58 = vmul.f32 1.442695, %v3498_v17 }
0x1170   :  { %v7193_v15 = vpop.permute.xlu1 %4255 }
0x1171   :  { %4263 = vrot.lane.b32.xlu1 %v7193_v15, %s6654_s0  ;;  %6590 = vpow2.f32 %v3505_v58 }
0x1172   :  { %6592 = vpow2.f32 %v3499_v22 }
0x1173   :  { %v6589_v18 = vpop.eup %6588  ;;  %6594 = vpow2.f32 %v3503_v28 }
0x1174   :  { %v3510_v19 = vsel %vm286_vm2, %v6589_v18, 0.0  ;;  %v3530_v25 = vpop.permute.xlu1 %3529 }
0x1178   :  { %v3532_v27 = vpop.permute.xlu1 %3531 }
0x117b   :  { %v6591_v53 = vpop.eup %6590 }
0x117c   :  { %v3516_v20 = vsel %vm286_vm2, %v6591_v53, 0.0  ;;  %v6593_v23 = vpop.eup %6592  ;;  %v3534_v29 = vpop.permute.xlu1 %3533 }
0x117d   :  { %v3507_v24 = vsel %vm286_vm2, %v6593_v23, 0.0  ;;  %v6595_v34 = vpop.eup %6594 }
0x117e   :  { %v3513_v36 = vsel %vm286_vm2, %v6595_v34, 0.0 }
0x1180   :  { %v4260_v33 = vpop.permute.xlu1 %4259 }
0x1192   :  { %4257 = vrot.lane.b32.xlu0 %v7132_v32, %s6654_s0 }
0x1195   :  { %3511 = vadd.xlane.f32.xlu1 %v3510_v19 }
0x1199   :  { %3517 = vadd.xlane.f32.xlu1 %v3516_v20 }
0x11b1   :  { %3508 = vadd.xlane.f32.xlu0 %v3507_v24 }
0x11c7   :  { %4261 = vrot.lane.b32.xlu0 %v7191_v5, %s6654_s0 }
0x11cc   :  { %3571 = vxpose.xlu1.b32.start.end [1/1] (short) (narrow) %v3530_v25, 8 }
0x11e3   :  { %v4264_v35 = vpop.permute.xlu1 %4263 }
0x11e4   :  { %4365 = vxpose.xlu1.b32.start.end [1/1] (short) (narrow) %v4264_v35, 8 }
0x11e6   :  { %3514 = vadd.xlane.f32.xlu0 %v3513_v36 }
0x11e9   :  { %v3555_v37 = vpop.trf.xlu0 }
0x1204   :  { %v4258_v38 = vpop.permute.xlu0 %4257 }
0x1213   :  { %3603 = vxpose.xlu0.b32.start.end [1/1] (short) (narrow) %v3532_v27, 8 }
0x1217   :  { %3635 = vxpose.xlu0.b32.start.end [1/1] (short) (narrow) %v3534_v29, 8 }
0x121b   :  { %4269 = vxpose.xlu0.b32.start.end [1/1] (short) (narrow) %v4258_v38, 8 }
0x121f   :  { %4301 = vxpose.xlu0.b32.start.end [1/1] (short) (narrow) %v4260_v33, 8 }
0x1222   :  { %v3512_v39 = vpop.xlane.xlu1 %3511 }
0x1226   :  { %v3518_v41 = vpop.xlane.xlu1 %3517 }
0x123e   :  { %v3509_v40 = vpop.xlane.xlu0 %3508 }
0x123f   :  { %6596 = vrcp.f32 %v3509_v40 }
0x1240   :  { %6598 = vrcp.f32 %v3512_v39 }
0x1241   :  { %6600 = vrcp.f32 %v3518_v41 }
0x1242   :  { %v4262_v42 = vpop.permute.xlu0 %4261 }
0x1243   :  { %4333 = vxpose.xlu0.b32.start.end [1/1] (short) (narrow) %v4262_v42, 8 }
0x1249   :  { %v6597_v43 = vpop.eup %6596 }
0x124a   :  { %v3523_v44 = vmul.f32 %v6597_v43, %v6593_v23  ;;  %v6599_v45 = vpop.eup %6598 }
0x124b   :  { %v3524_v46 = vmul.f32 %v6599_v45, %v6589_v18  ;;  %v6601_v48 = vpop.eup %6600 }
0x124c   :  { %6306 = vmatpush3.xpose.msk.msra.mxu0 %vm286_vm2, %v3523_v44  ;;  %v3587_v49 = vpop.trf.xlu1  ;;  %v3526_v50 = vmul.f32 %v6601_v48, %v6591_v53 }
0x124d   :  { %6310 = vmatprep.subr.mxu0 %v6656_v13 }
0x124f   :  { %6308 = vmatmul.mubr.msk.f32.vlgmr.msra.gmra.mrb[30].mxu0 %vm286_vm2, %v3555_v37 }
0x1250   :  { %6311 = vmatpush3.xpose.msk.msra.mxu0 %vm286_vm2, %v3524_v46  ;;  %6312 = vmatprep.mubr.msk.f32.mxu0 %vm6657_vm1, %v6656_v13 }
0x1251   :  { %6320 = vmatprep.subr.mxu0 %v6656_v13 }
0x1253   :  { %6313 = vmatmul.mubr.msk.f32.vlgmr.msra.gmra.mrb[32].mxu0 %vm286_vm2, %v3587_v49 }
0x1254   :  { %6321 = vmatpush3.xpose.msk.msra.mxu0 %vm286_vm2, %v3526_v50  ;;  %6322 = vmatprep.mubr.msk.f32.mxu0 %vm6657_vm1, %v6656_v13 }
0x1255   :  { %6330 = vmatprep.subr.mxu0 %v6656_v13 }
0x1264   :  { %v4381_v61 = vpop.trf.xlu1 }
0x1273   :  { %v3515_v51 = vpop.xlane.xlu0 %3514 }
0x1274   :  { %6602 = vrcp.f32 %v3515_v51 }
0x127e   :  { %v6603_v52 = vpop.eup %6602 }
0x127f   :  { %v3525_v54 = vmul.f32 %v6603_v52, %v6595_v34 }
0x1281   :  { %6316 = vmatpush3.xpose.msk.msra.mxu1 %vm286_vm2, %v3525_v54 }
0x1282   :  { %6325 = vmatprep.subr.mxu1 %v6656_v13 }
0x1293   :  { %v3619_v55 = vpop.trf.xlu0 }
0x1294   :  { %6318 = vmatmul.mubr.msk.f32.vlgmr.msra.gmra.mrb[20].mxu1 %vm286_vm2, %v3619_v55 }
0x1295   :  { %6327 = vmatprep.mubr.msk.f32.mxu1 %vm6657_vm1, %v6656_v13 }
0x1297   :  { %v3651_v56 = vpop.trf.xlu0 }
0x1298   :  { %6323 = vmatmul.mubr.msk.f32.vlgmr.msra.gmra.mrb[34].mxu0 %vm286_vm2, %v3651_v56 }
0x1299   :  { %6332 = vmatprep.mubr.msk.f32.mxu0 %vm6657_vm1, %v6656_v13 }
0x129b   :  { %v4285_v57 = vpop.trf.xlu0 }
0x129c   :  { %6326 = vmatpush3.msra.mxu1 %v4285_v57 }
0x129d   :  { %6328 = vmatmul.mubr.msk.f32.vlgmr.msra.gmra.mrb[22].mxu1 %vm286_vm2, %v7132_v32  ;;  %6335 = vmatprep.subr.mxu1 %v6656_v13 }
0x129e   :  { %6337 = vmatprep.mubr.msk.f32.mxu1 %vm6657_vm1, %v6656_v13 }
0x129f   :  { %v4317_v60 = vpop.trf.xlu0 }
0x12a0   :  { %6331 = vmatpush3.msra.mxu0 %v4317_v60 }
0x12a1   :  { %6333 = vmatmul.mubr.msk.f32.vlgmr.msra.gmra.mrb[36].mxu0 %vm286_vm2, %v7187_v4  ;;  %6340 = vmatprep.subr.mxu0 %v6656_v13 }
0x12a2   :  { %6341 = vmatpush3.msra.mxu0 %v4381_v61  ;;  %6342 = vmatprep.mubr.msk.f32.mxu0 %vm6657_vm1, %v6656_v13 }
0x12a3   :  { %6350 = vmatprep.subr.mxu0 %v6656_v13 }
0x12a5   :  { %6343 = vmatmul.mubr.msk.f32.vlgmr.msra.gmra.mrb[38].mxu0 %vm286_vm2, %v7193_v15 }
0x12a6   :  { %6352 = vmatprep.mubr.msk.f32.mxu0 %vm6657_vm1, %v6656_v13 }
0x12c3   :  { %v4349_v10 = vpop.trf.xlu0 }
0x12c4   :  { %6336 = vmatpush3.msra.mxu1 %v4349_v10 }
0x12c5   :  { %6338 = vmatmul.mubr.msk.f32.vlgmr.msra.gmra.mrb[24].mxu1 %vm286_vm2, %v7191_v5  ;;  %6345 = vmatprep.subr.mxu1 %v6656_v13 }
0x12c6   :  { %6347 = vmatprep.mubr.msk.f32.mxu1 %vm6657_vm1, %v6656_v13 }
0x1322   :  { %v7245_v8 = vpop.f32.mrb[30].mxu0 }
0x1323   :  { %v6309_v62 = vpop.f32.mrb[31].mxu0 }
0x1326   :  { %v7247_v63 = vpop.f32.mrb[32].mxu0 }
0x1327   :  { %v6314_v0 = vpop.f32.mrb[33].mxu0 }
0x1367   :  { %v7249_v1 = vpop.f32.mrb[20].mxu1 }
0x1368   :  { %v6319_v2 = vpop.f32.mrb[21].mxu1 }
0x136b   :  { %v7251_v3 = vpop.f32.mrb[34].mxu0 }
0x136c   :  { %v6324_v6 = vpop.f32.mrb[35].mxu0 }
0x1370   :  { %v4465_v7 = vpop.f32.mrb[22].mxu1 }
0x1371   :  { %v4685_v12 = vmul.f32 0.17677669, %v4465_v7  ;;  %v6329_v14 = vpop.f32.mrb[23].mxu1 }
0x1373   :  { %v4694_v11 = vadd.f32 %v5937_v9, %v4685_v12 }
0x1374   :  { %v4537_v47 = vpop.f32.mrb[36].mxu0 }
0x1375   :  { %v4686_v17 = vmul.f32 0.17677669, %v4537_v47  ;;  %v6334_v58 = vpop.f32.mrb[37].mxu0  ;;  %v4698_v18 = vsel %vm286_vm2, %v4694_v11, -inf }
0x1376   :  { %4699 = vmax.xlane.f32.xlu0 %v4698_v18 }
0x1377   :  { %v4695_v19 = vadd.f32 %v5937_v9, %v4686_v17 }
0x1378   :  { %v4681_v53 = vpop.f32.mrb[38].mxu0 }
0x1379   :  { %v4688_v20 = vmul.f32 0.17677669, %v4681_v53  ;;  %v6344_v21 = vpop.f32.mrb[39].mxu0  ;;  %v4701_v22 = vsel %vm286_vm2, %v4695_v19, -inf }
0x137a   :  { %4702 = vmax.xlane.f32.xlu1 %v4701_v22 }
0x137b   :  { %v4697_v23 = vadd.f32 %v5937_v9, %v4688_v20 }
0x137d   :  { %v4707_v24 = vsel %vm286_vm2, %v4697_v23, -inf }
0x137e   :  { %4708 = vmax.xlane.f32.xlu0 %v4707_v24 }
0x1394   :  { %4744 = vrot.lane.b32.xlu0 %v7187_v4, %s6658_s15 }
0x1398   :  { %v4609_v25 = vpop.f32.mrb[24].mxu1 }
0x1399   :  { %v4687_v26 = vmul.f32 0.17677669, %v4609_v25  ;;  %v6339_v27 = vpop.f32.mrb[25].mxu1 }
0x139b   :  { %v4696_v28 = vadd.f32 %v5937_v9, %v4687_v26 }
0x139d   :  { %v4704_v29 = vsel %vm286_vm2, %v4696_v28, -inf }
0x139e   :  { %4705 = vmax.xlane.f32.xlu1 %v4704_v29 }
0x13af   :  { %4742 = vrot.lane.b32.xlu1 %v7132_v32, %s6658_s15 }
0x13b3   :  { %4746 = vrot.lane.b32.xlu1 %v7191_v5, %s6658_s15 }
0x13b7   :  { %4748 = vrot.lane.b32.xlu1 %v7193_v15, %s6658_s15 }
0x1403   :  { %v4700_v33 = vpop.xlane.xlu0 %4699 }
0x1404   :  { %v4710_v34 = vsub.f32 %v4694_v11, %v4700_v33 }
0x1406   :  { %v4714_v35 = vmul.f32 1.442695, %v4710_v34 }
0x1407   :  { %v4703_v4 = vpop.xlane.xlu1 %4702 }
0x1408   :  { %6604 = vpow2.f32 %v4714_v35  ;;  %v4711_v36 = vsub.f32 %v4695_v19, %v4703_v4 }
0x140a   :  { %v4716_v37 = vmul.f32 1.442695, %v4711_v36 }
0x140b   :  { %v4709_v5 = vpop.xlane.xlu0 %4708 }
0x140c   :  { %6606 = vpow2.f32 %v4716_v37  ;;  %v4713_v41 = vsub.f32 %v4697_v23, %v4709_v5 }
0x140e   :  { %v4720_v43 = vmul.f32 1.442695, %v4713_v41 }
0x140f   :  { %v4745_v54 = vpop.permute.xlu0 %4744 }
0x1412   :  { %v6605_v38 = vpop.eup %6604 }
0x1413   :  { %v4722_v39 = vsel %vm286_vm2, %v6605_v38, 0.0 }
0x1414   :  { %4723 = vadd.xlane.f32.xlu0 %v4722_v39 }
0x1416   :  { %v6607_v40 = vpop.eup %6606 }
0x1417   :  { %v4725_v32 = vsel %vm286_vm2, %v6607_v40, 0.0 }
0x1418   :  { %4726 = vadd.xlane.f32.xlu1 %v4725_v32 }
0x142b   :  { %v4706_v42 = vpop.xlane.xlu1 %4705 }
0x142c   :  { %v4712_v15 = vsub.f32 %v4696_v28, %v4706_v42 }
0x142e   :  { %v4718_v44 = vmul.f32 1.442695, %v4712_v15 }
0x142f   :  { %v4743_v50 = vpop.permute.xlu1 %4742 }
0x1430   :  { %6608 = vpow2.f32 %v4718_v44 }
0x1431   :  { %6610 = vpow2.f32 %v4720_v43 }
0x1433   :  { %v4747_v51 = vpop.permute.xlu1 %4746 }
0x1437   :  { %v4749_v52 = vpop.permute.xlu1 %4748 }
0x143a   :  { %v6609_v45 = vpop.eup %6608 }
0x143b   :  { %v4728_v46 = vsel %vm286_vm2, %v6609_v45, 0.0  ;;  %v6611_v48 = vpop.eup %6610 }
0x143c   :  { %4729 = vadd.xlane.f32.xlu0 %v4728_v46  ;;  %v4731_v49 = vsel %vm286_vm2, %v6611_v48, 0.0 }
0x1440   :  { %4732 = vadd.xlane.f32.xlu0 %v4731_v49 }
0x144b   :  { %4754 = vxpose.xlu1.b32.start.end [1/1] (short) (narrow) %v4743_v50, 8 }
0x144f   :  { %4850 = vxpose.xlu1.b32.start.end [1/1] (short) (narrow) %v4749_v52, 8 }
0x1453   :  { %4003 = vxpose.xlu1.b32.start.end [1/1] (short) (narrow) %v7247_v63, 8 }
0x1457   :  { %4067 = vxpose.xlu1.b32.start.end [1/1] (short) (narrow) %v7251_v3, 8 }
0x146d   :  { %4786 = vxpose.xlu0.b32.start.end [1/1] (short) (narrow) %v4745_v54, 8 }
0x1471   :  { %4818 = vxpose.xlu0.b32.start.end [1/1] (short) (narrow) %v4747_v51, 8 }
0x1475   :  { %3971 = vxpose.xlu0.b32.start.end [1/1] (short) (narrow) %v7245_v8, 8 }
0x1479   :  { %4035 = vxpose.xlu0.b32.start.end [1/1] (short) (narrow) %v7249_v1, 8 }
0x14a1   :  { %v4724_v55 = vpop.xlane.xlu0 %4723 }
0x14a2   :  { %6612 = vrcp.f32 %v4724_v55  ;;  %v5948_v55 = vld [vmem:[%s7465_s4 + $0x20] sm:$0xff] }
0x14a5   :  { %v4727_v56 = vpop.xlane.xlu1 %4726 }
0x14a6   :  { %6614 = vrcp.f32 %v4727_v56  ;;  %v5949_v56 = vld [vmem:[%s7465_s4 + $0x28] sm:$0xff] }
0x14ac   :  { %v6613_v57 = vpop.eup %6612 }
0x14ad   :  { %v4738_v60 = vmul.f32 %v6613_v57, %v6605_v38  ;;  %v6486_v57 = vpack.c.bf16 %v5949_v56, %v5948_v55  ;;  %v5953_v55 = vld [vmem:[%s7466_s5 + $0x1] ss:$0 sm:$0xff] }
0x14af   :  { %6346 = vmatpush3.xpose.msk.msra.mxu1 %vm286_vm2, %v4738_v60 }
0x14b0   :  { %v6615_v61 = vpop.eup %6614  ;;  %6355 = vmatprep.subr.mxu1 %v6656_v13 }
0x14b1   :  { %v4739_v10 = vmul.f32 %v6615_v61, %v6607_v40 }
0x14b3   :  { %6351 = vmatpush3.xpose.msk.msra.mxu0 %vm286_vm2, %v4739_v10 }
0x14b4   :  { %6360 = vmatprep.subr.mxu0 %v6656_v13 }
0x14c9   :  { %v4730_v62 = vpop.xlane.xlu0 %4729 }
0x14ca   :  { %6616 = vrcp.f32 %v4730_v62 }
0x14cb   :  { %v4770_v8 = vpop.trf.xlu1 }
0x14cc   :  { %6348 = vmatmul.mubr.msk.f32.vlgmr.msra.gmra.mrb[26].mxu1 %vm286_vm2, %v4770_v8 }
0x14cd   :  { %6357 = vmatprep.mubr.msk.f32.mxu1 %vm6657_vm1, %v6656_v13  ;;  %v4733_v1 = vpop.xlane.xlu0 %4732 }
0x14ce   :  { %6618 = vrcp.f32 %v4733_v1 }
0x14cf   :  { %v4866_v7 = vpop.trf.xlu1 }
0x14d3   :  { %v4019_v47 = vpop.trf.xlu1 }
0x14d4   :  { %v6617_v63 = vpop.eup %6616 }
0x14d5   :  { %v4740_v0 = vmul.f32 %v6617_v63, %v6609_v45 }
0x14d7   :  { %6356 = vmatpush3.xpose.msk.msra.mxu1 %vm286_vm2, %v4740_v0  ;;  %v4083_v58 = vpop.trf.xlu1 }
0x14d8   :  { %v6619_v2 = vpop.eup %6618  ;;  %v4115_v53 = vcombine.low %v4019_v47, %v4083_v58  ;;  %v4116_v20 = vcombine.high %v4019_v47, %v4083_v58 }
0x14d9   :  { %v4741_v3 = vmul.f32 %v6619_v2, %v6611_v48 }
0x14da   :  { %v4123_v24 = vrot.slane %v4115_v53, %v6938_v59  ;;  %v4130_v25 = vrot.slane %v4116_v20, %v6938_v59 }
0x14ed   :  { %v4802_v6 = vpop.trf.xlu0 }
0x14ee   :  { %6353 = vmatmul.mubr.msk.f32.vlgmr.msra.gmra.mrb[40].mxu0 %vm286_vm2, %v4802_v6 }
0x14ef   :  { %6361 = vmatpush3.xpose.msk.msra.mxu0 %vm286_vm2, %v4741_v3  ;;  %6362 = vmatprep.mubr.msk.f32.mxu0 %vm6657_vm1, %v6656_v13 }
0x14f0   :  { %6487 = vmatprep.subr.bf16.mxu0 %v6486_v57 }
0x14f1   :  { %v4834_v9 = vpop.trf.xlu0 }
0x14f2   :  { %6358 = vmatmul.mubr.msk.f32.vlgmr.msra.gmra.mrb[28].mxu1 %vm286_vm2, %v4834_v9  ;;  %6363 = vmatmul.mubr.msk.f32.vlgmr.msra.gmra.mrb[42].mxu0 %vm286_vm2, %v4866_v7 }
0x14f3   :  { %6489 = vmatpush3.bf16.msra.mxu0 %v6486_v57 }
0x14f5   :  { %v3987_v11 = vpop.trf.xlu0 }
0x14f9   :  { %v4051_v17 = vpop.trf.xlu0 }
0x14fa   :  { %v4099_v18 = vcombine.low %v3987_v11, %v4051_v17  ;;  %v4100_v19 = vcombine.high %v3987_v11, %v4051_v17 }
0x14fc   :  { %v4107_v22 = vrot.slane %v4099_v18, %v6938_v59  ;;  %v4114_v23 = vrot.slane %v4100_v19, %v6938_v59  ;;  %v5950_v18 = vld [vmem:[%s7465_s4 + $0x30] sm:$0xff]  ;;  %v5951_v19 = vld [vmem:[%s7465_s4 + $0x38] sm:$0xff] }
0x14fd   :  { %v6490_v53 = vpack.c.bf16 %v5951_v19, %v5950_v18  ;;  %v5968_v19 = vld [vmem:[%s7473_s12 + $0x80] sm:$0xff] }
0x14fe   :  { %v4131_v33 = vcombine.low %v4107_v22, %v4123_v24  ;;  %v4132_v34 = vcombine.high %v4107_v22, %v4123_v24  ;;  %v4147_v35 = vcombine.low %v4114_v23, %v4130_v25  ;;  %v4148_v4 = vcombine.high %v4114_v23, %v4130_v25 }
0x14ff   :  { %6491 = vmatprep.subr.bf16.mxu0 %v6490_v53 }
0x1500   :  { %v4139_v36 = vrot.slane %v4131_v33, %v6944_v16  ;;  %v4146_v37 = vrot.slane %v4132_v34, %v6944_v16  ;;  %v4155_v38 = vrot.slane %v4147_v35, %v6944_v16  ;;  %v4162_v39 = vrot.slane %v4148_v4, %v6944_v16  ;;  %6493 = vmatpush3.bf16.msra.mxu0 %v6490_v53  ;;  %v5969_v53 = vld [vmem:[%s7473_s12 + $0x88] sm:$0xff] }
0x1502   :  { %v4167_v40 = vcombine.low %v4139_v36, %v4146_v37  ;;  %v5931_v32 = vcombine.high %v4139_v36, %v4146_v37  ;;  %v4183_v5 = vcombine.low %v4155_v38, %v4162_v39  ;;  %v5932_v41 = vcombine.high %v4155_v38, %v4162_v39 }
0x1504   :  { %v4174_v42 = vrot.slane %v4167_v40, %v6938_v59  ;;  %v4182_v15 = vrot.slane %v5931_v32, %v6938_v59  ;;  %v4190_v43 = vrot.slane %v4183_v5, %v6938_v59  ;;  %v4198_v44 = vrot.slane %v5932_v41, %v6938_v59 }
0x1506   :  { %v4200_v45 = vcombine.high %v4174_v42, %v4182_v15  ;;  %v4216_v46 = vcombine.high %v4190_v43, %v4198_v44  ;;  %v4199_v51 = vcombine.low %v4174_v42, %v4182_v15  ;;  %v4215_v52 = vcombine.low %v4190_v43, %v4198_v44 }
0x1508   :  { %v4214_v48 = vrot.slane %v4200_v45, %v6944_v16  ;;  %v4230_v49 = vrot.slane %v4216_v46, %v6944_v16  ;;  %v4207_v60 = vrot.slane %v4199_v51, %v6944_v16  ;;  %v4223_v61 = vrot.slane %v4215_v52, %v6944_v16 }
0x150a   :  { %v4233_v50 = vcombine.low %v4214_v48, %v4230_v49  ;;  %v4234_v54 = vcombine.high %v4214_v48, %v4230_v49  ;;  %v4232_v10 = vcombine.high %v4207_v60, %v4223_v61  ;;  %v4231_v15 = vcombine.low %v4207_v60, %v4223_v61 }
0x159f   :  { %v4954_v12 = vpop.f32.mrb[26].mxu1 }
0x15a0   :  { %5186 = vxpose.xlu0.b32.start.end [1/1] (short) (narrow) %v4954_v12, 8  ;;  %v6349_v14 = vpop.f32.mrb[27].mxu1 }
0x15c1   :  { %v5030_v21 = vpop.f32.mrb[40].mxu0 }
0x15c2   :  { %5218 = vxpose.xlu1.b32.start.end [1/1] (short) (narrow) %v5030_v21, 8  ;;  %v6354_v13 = vpop.f32.mrb[41].mxu0 }
0x15c5   :  { %v5106_v26 = vpop.f32.mrb[28].mxu1  ;;  %v5182_v27 = vpop.f32.mrb[42].mxu0 }
0x15c6   :  { %5250 = vxpose.xlu0.b32.start.end [1/1] (short) (narrow) %v5106_v26, 8  ;;  %5282 = vxpose.xlu1.b32.start.end [1/1] (short) (narrow) %v5182_v27, 8  ;;  %v6359_v28 = vpop.f32.mrb[29].mxu1  ;;  %v6364_v29 = vpop.f32.mrb[43].mxu0 }
0x15e4   :  { %4240 = vrot.lane.b32.xlu1 %v4233_v50, %s6661_s18 }
0x15e8   :  { %4244 = vrot.lane.b32.xlu1 %v4234_v54, %s6662_s23 }
0x15ef   :  { %4236 = vrot.lane.b32.xlu0 %v4232_v10, %s6663_s24 }
0x1620   :  { %v5202_v62 = vpop.trf.xlu0 }
0x1642   :  { %v5234_v8 = vpop.trf.xlu1 }
0x1646   :  { %v5266_v63 = vpop.trf.xlu0  ;;  %v5298_v0 = vpop.trf.xlu1 }
0x1647   :  { %v5314_v1 = vcombine.low %v5202_v62, %v5266_v63  ;;  %v5315_v2 = vcombine.high %v5202_v62, %v5266_v63  ;;  %v5330_v3 = vcombine.low %v5234_v8, %v5298_v0  ;;  %v5331_v6 = vcombine.high %v5234_v8, %v5298_v0 }
0x1649   :  { %v5322_v7 = vrot.slane %v5314_v1, %v6938_v59  ;;  %v5329_v9 = vrot.slane %v5315_v2, %v6938_v59  ;;  %v5338_v12 = vrot.slane %v5330_v3, %v6938_v59  ;;  %v5345_v14 = vrot.slane %v5331_v6, %v6938_v59 }
0x164b   :  { %v5346_v11 = vcombine.low %v5322_v7, %v5338_v12  ;;  %v5347_v47 = vcombine.high %v5322_v7, %v5338_v12  ;;  %v5362_v17 = vcombine.low %v5329_v9, %v5345_v14  ;;  %v5363_v58 = vcombine.high %v5329_v9, %v5345_v14  ;;  %v5960_v14 = vld [vmem:[%s7471_s10 + $0x20] sm:$0xff] }
0x164d   :  { %v5354_v20 = vrot.slane %v5346_v11, %v6944_v16  ;;  %v5361_v21 = vrot.slane %v5347_v47, %v6944_v16  ;;  %v5370_v13 = vrot.slane %v5362_v17, %v6944_v16  ;;  %v5377_v22 = vrot.slane %v5363_v58, %v6944_v16  ;;  %v5961_v11 = vld [vmem:[%s7471_s10 + $0x28] sm:$0xff]  ;;  %v5962_v17 = vld [vmem:[%s7471_s10 + $0x30] sm:$0xff]  ;;  %v5963_v58 = vld [vmem:[%s7471_s10 + $0x38] sm:$0xff] }
0x164e   :  { %v6494_v47 = vpack.c.bf16 %v5961_v11, %v5960_v14  ;;  %v6498_v18 = vpack.c.bf16 %v5963_v58, %v5962_v17 }
0x164f   :  { %v5382_v23 = vcombine.low %v5354_v20, %v5361_v21  ;;  %v5946_v24 = vcombine.high %v5354_v20, %v5361_v21  ;;  %v5398_v25 = vcombine.low %v5370_v13, %v5377_v22  ;;  %v5947_v26 = vcombine.high %v5370_v13, %v5377_v22  ;;  %v5970_v20 = vld [vmem:[%s7473_s12 + $0x90] sm:$0xff]  ;;  %v5971_v13 = vld [vmem:[%s7473_s12 + $0x98] sm:$0xff] }
0x1650   :  { %6495 = vmatprep.subr.bf16.mxu0 %v6494_v47  ;;  %v6502_v21 = vpack.c.bf16 %v5969_v53, %v5968_v19  ;;  %v6506_v22 = vpack.c.bf16 %v5971_v13, %v5970_v20 }
0x1651   :  { %v5389_v27 = vrot.slane %v5382_v23, %v6938_v59  ;;  %v5397_v28 = vrot.slane %v5946_v24, %v6938_v59  ;;  %v5405_v29 = vrot.slane %v5398_v25, %v6938_v59  ;;  %v5413_v33 = vrot.slane %v5947_v26, %v6938_v59  ;;  %v5972_v23 = vld [vmem:[%s7473_s12 + $0xa0] sm:$0xff]  ;;  %v5973_v24 = vld [vmem:[%s7473_s12 + $0xa8] sm:$0xff]  ;;  %v5974_v26 = vld [vmem:[%s7473_s12 + $0xb0] sm:$0xff] }
0x1652   :  { %6503 = vmatprep.subr.bf16.mxu1 %v6502_v21  ;;  %v6510_v25 = vpack.c.bf16 %v5973_v24, %v5972_v23 }
0x1653   :  { %v5415_v34 = vcombine.high %v5389_v27, %v5397_v28  ;;  %v5431_v35 = vcombine.high %v5405_v29, %v5413_v33  ;;  %v5414_v4 = vcombine.low %v5389_v27, %v5397_v28  ;;  %v5430_v36 = vcombine.low %v5405_v29, %v5413_v33  ;;  %6505 = vmatpush3.bf16.msra.mxu1 %v6502_v21  ;;  %v5975_v27 = vld [vmem:[%s7473_s12 + $0xb8] sm:$0xff]  ;;  %v5976_v29 = vld [vmem:[%s7473_s12 + $0xc0] sm:$0xff]  ;;  %v5977_v33 = vld [vmem:[%s7473_s12 + $0xc8] sm:$0xff] }
0x1654   :  { %6507 = vmatprep.subr.bf16.mxu1 %v6506_v22  ;;  %v6514_v28 = vpack.c.bf16 %v5975_v27, %v5974_v26  ;;  %v5988_v26 = vld [vmem:[%s7469_s8 + $0x1] ss:$0 sm:$0xff] }
0x1655   :  { %v5429_v37 = vrot.slane %v5415_v34, %v6944_v16  ;;  %v5445_v38 = vrot.slane %v5431_v35, %v6944_v16  ;;  %v5422_v39 = vrot.slane %v5414_v4, %v6944_v16  ;;  %v5438_v40 = vrot.slane %v5430_v36, %v6944_v16  ;;  %v5978_v35 = vld [vmem:[%s7473_s12 + $0xd0] sm:$0xff]  ;;  %v5979_v4 = vld [vmem:[%s7473_s12 + $0xd8] sm:$0xff] }
0x1656   :  { %v4241_v42 = vpop.permute.xlu1 %4240  ;;  %v6518_v34 = vpack.c.bf16 %v5977_v33, %v5976_v29  ;;  %v6522_v36 = vpack.c.bf16 %v5979_v4, %v5978_v35  ;;  %v5989_v33 = vld [vmem:[%s7470_s9 + $0x1] ss:$0 sm:$0xff] }
0x1657   :  { %v5448_v32 = vcombine.low %v5429_v37, %v5445_v38  ;;  %v5447_v5 = vcombine.high %v5422_v39, %v5438_v40  ;;  %v5446_v41 = vcombine.low %v5422_v39, %v5438_v40  ;;  %v5449_v59 = vcombine.high %v5429_v37, %v5445_v38  ;;  %6509 = vmatpush3.bf16.msra.mxu1 %v6506_v22  ;;  %v5980_v37 = vld [vmem:[%s7473_s12 + $0xe0] sm:$0xff]  ;;  %v5981_v38 = vld [vmem:[%s7473_s12 + $0xe8] sm:$0xff] }
0x1658   :  { %6511 = vmatprep.subr.bf16.mxu1 %v6510_v25  ;;  %v6526_v39 = vpack.c.bf16 %v5981_v38, %v5980_v37 }
0x1659   :  { %5455 = vrot.lane.b32.xlu0 %v5448_v32, %s6661_s18  ;;  %5451 = vrot.lane.b32.xlu1 %v5447_v5, %s6663_s24 }
0x165a   :  { %v4245_v44 = vpop.permute.xlu1 %4244 }
0x165b   :  { %6513 = vmatpush3.bf16.msra.mxu1 %v6510_v25 }
0x165c   :  { %6515 = vmatprep.subr.bf16.mxu1 %v6514_v28 }
0x165d   :  { %5459 = vrot.lane.b32.xlu1 %v5449_v59, %s6662_s23 }
0x165f   :  { %6517 = vmatpush3.bf16.msra.mxu1 %v6514_v28 }
0x1660   :  { %6519 = vmatprep.subr.bf16.mxu1 %v6518_v34 }
0x1661   :  { %v4237_v43 = vpop.permute.xlu0 %4236 }
0x1662   :  { %v4247_v45 = vsel %vm286_vm2, %v4231_v15, %v4237_v43  ;;  %v5958_v43 = vld [vmem:[%s7467_s6 + $0x1] ss:$0 sm:$0xff] }
0x1663   :  { %v4248_v46 = vsel %vm1353_vm3, %v4247_v45, %v4241_v42  ;;  %6521 = vmatpush3.bf16.msra.mxu1 %v6518_v34  ;;  %v5959_v45 = vld [vmem:[%s7468_s7 + $0x1] ss:$0 sm:$0xff] }
0x1664   :  { %v4249_v16 = vsel %vm1355_vm4, %v4248_v46, %v4245_v44  ;;  %6523 = vmatprep.subr.bf16.mxu1 %v6522_v36 }
0x1665   :  { %6373 = vmatprep.mubr.msk.f32.mxu0 %vm57_vm0, %v4249_v16 }
0x1667   :  { %6525 = vmatpush3.bf16.msra.mxu1 %v6522_v36 }
0x1668   :  { %6527 = vmatprep.subr.bf16.mxu1 %v6526_v39 }
0x166b   :  { %6529 = vmatpush3.bf16.msra.mxu1 %v6526_v39 }
0x16cb   :  { %v5452_v48 = vpop.permute.xlu1 %5451  ;;  %v5456_v49 = vpop.permute.xlu0 %5455 }
0x16cc   :  { %v5462_v50 = vsel %vm286_vm2, %v5446_v41, %v5452_v48 }
0x16cd   :  { %v5463_v51 = vsel %vm1353_vm3, %v5462_v50, %v5456_v49 }
0x16cf   :  { %v5460_v52 = vpop.permute.xlu1 %5459 }
0x16d0   :  { %v5464_v54 = vsel %vm1355_vm4, %v5463_v51, %v5460_v52  ;;  %v5982_v52 = vld [vmem:[%s7473_s12 + $0xf0] sm:$0xff] }
0x16d1   :  { %6374 = vmatmul.mubr.msk.f32.vlgmr.msra.gmra.mrb[44].mxu0 %vm57_vm0, %v5464_v54  ;;  %v5983_v54 = vld [vmem:[%s7473_s12 + $0xf8] sm:$0xff] }
0x16d2   :  { %6497 = vmatpush3.bf16.msra.mxu0 %v6494_v47 }
0x16d3   :  { %6499 = vmatprep.subr.bf16.mxu0 %v6498_v18 }
0x16d6   :  { %6501 = vmatpush3.bf16.msra.mxu0 %v6498_v18 }
0x17a4   :  { %v6375_v56 = vpop.f32.mrb[44].mxu0 }
0x17a5   :  { %v5556_v57 = vadd.f32 %v6375_v56, %v5953_v55  ;;  %v5550_v60 = vpop.f32.mrb[45].mxu0  ;;  %v5965_v56 = vld [vmem:[%s7472_s11 + $0x1] ss:$0 sm:$0xff] }
0x17a6   :  { %v5551_v61 = vadd.f32 %v5953_v55, %v5550_v60  ;;  %v6530_v55 = vpack.c.bf16 %v5983_v54, %v5982_v52 }
0x17a7   :  { %v5560_v10 = vadd.f32 %v5556_v57, %v7124_v31 }
0x17a8   :  { %v5559_v62 = vadd.f32 %v5551_v61, %v7122_v30  ;;  %6531 = vmatprep.subr.bf16.mxu1 %v6530_v55 }
0x17a9   :  { %v5568_v8 = vsel %vm57_vm0, %v5560_v10, 0.0  ;;  %6533 = vmatpush3.bf16.msra.mxu1 %v6530_v55 }
0x17aa   :  { %5569 = vadd.xlane.f32.xlu1 %v5568_v8  ;;  %v5565_v63 = vsel %vm57_vm0, %v5559_v62, 0.0 }
0x17ab   :  { %5566 = vadd.xlane.f32.xlu0 %v5565_v63  ;;  %v5985_v63 = vld [vmem:[%s7474_s13 + $0x1] ss:$0 sm:$0xff] }
0x1837   :  { %v5570_v0 = vpop.xlane.xlu1 %5569 }
0x1838   :  { %v5572_v1 = vmul.f32 0.03125, %v5570_v0  ;;  %v5567_v2 = vpop.xlane.xlu0 %5566 }
0x1839   :  { %v5571_v3 = vmul.f32 0.03125, %v5567_v2 }
0x183a   :  { %v7355_v6 = vsub.f32 %v5560_v10, %v5572_v1 }
0x183b   :  { %v5573_v7 = vsub.f32 %v5559_v62, %v5571_v3 }
0x183c   :  { %v5576_v31 = vmul.f32 %v7355_v6, %v7355_v6 }
0x183d   :  { %v5575_v9 = vmul.f32 %v5573_v7, %v5573_v7 }
0x183e   :  { %v5580_v30 = vsel %vm57_vm0, %v5576_v31, 0.0 }
0x183f   :  { %v5577_v12 = vsel %vm57_vm0, %v5575_v9, 0.0 }
0x1840   :  { %5578 = vadd.xlane.f32.xlu0 %v5577_v12 }
0x1844   :  { %5581 = vadd.xlane.f32.xlu0 %v5580_v30 }
0x18cd   :  { %v5579_v40 = vpop.xlane.xlu0 %5578 }
0x18ce   :  { %v5583_v32 = vmul.f32 0.03125, %v5579_v40 }
0x18d0   :  { %v5585_v5 = vadd.f32 1e-05, %v5583_v32 }
0x18d1   :  { %v5582_v41 = vpop.xlane.xlu0 %5581 }
0x18d2   :  { %6620 = vrsqrt.f32 %v5585_v5  ;;  %v5584_v59 = vmul.f32 0.03125, %v5582_v41 }
0x18d4   :  { %v5586_v42 = vadd.f32 1e-05, %v5584_v59 }
0x18d6   :  { %6622 = vrsqrt.f32 %v5586_v42 }
0x18dc   :  { %v6621_v15 = vpop.eup %6620 }
0x18dd   :  { %v5589_v44 = vmul.f32 %v6621_v15, %v5573_v7 }
0x18df   :  { %v5597_v46 = vmul.f32 %v5958_v43, %v5589_v44 }
0x18e0   :  { %v6623_v16 = vpop.eup %6622 }
0x18e1   :  { %v5590_v48 = vmul.f32 %v6623_v16, %v7355_v6  ;;  %v5605_v49 = vadd.f32 %v5959_v45, %v5597_v46 }
0x18e3   :  { %v5598_v50 = vmul.f32 %v5958_v43, %v5590_v48  ;;  %6384 = vmatprep.mubr.msk.f32.mxu0 %vm57_vm0, %v5605_v49 }
0x18e5   :  { %v5606_v51 = vadd.f32 %v5959_v45, %v5598_v50 }
0x18e7   :  { %6385 = vmatmul.mubr.msk.f32.vlgmr.msra.gmra.mrb[46].mxu0 %vm57_vm0, %v5606_v51 }
0x19ba   :  { %v6386_v57 = vpop.f32.mrb[46].mxu0 }
0x19bb   :  { %v5698_v60 = vadd.f32 %v6386_v57, %v5965_v56  ;;  %v5692_v61 = vpop.f32.mrb[47].mxu0 }
0x19bc   :  { %v5693_v10 = vadd.f32 %v5965_v56, %v5692_v61 }
0x19bd   :  { %v5702_v8 = vmax.f32 %v5698_v60, 0.0 }
0x19be   :  { %v5701_v62 = vmax.f32 %v5693_v10, 0.0 }
0x19c0   :  { %6419 = vmatprep.mubr.f32.mxu1 %v5701_v62 }
0x19c1   :  { %6420 = vmatmul.mubr.f32.vlgmr.msra.gmra.mrb[30].mxu1 %v5702_v8 }
0x1a94   :  { %v6421_v0 = vpop.f32.mrb[30].mxu1 }
0x1a95   :  { %v5800_v1 = vadd.f32 %v6421_v0, %v5985_v63  ;;  %v5794_v2 = vpop.f32.mrb[31].mxu1 }
0x1a96   :  { %v5795_v3 = vadd.f32 %v5985_v63, %v5794_v2 }
0x1a97   :  { %v5804_v6 = vadd.f32 %v5800_v1, %v5606_v51 }
0x1a98   :  { %v5803_v7 = vadd.f32 %v5795_v3, %v5605_v49 }
0x1a99   :  { %v5812_v9 = vsel %vm57_vm0, %v5804_v6, 0.0 }
0x1a9a   :  { %5813 = vadd.xlane.f32.xlu0 %v5812_v9  ;;  %v5809_v12 = vsel %vm57_vm0, %v5803_v7, 0.0 }
0x1a9b   :  { %5810 = vadd.xlane.f32.xlu1 %v5809_v12 }
0x1b27   :  { %v5814_v31 = vpop.xlane.xlu0 %5813 }
0x1b28   :  { %v5816_v30 = vmul.f32 0.03125, %v5814_v31  ;;  %v5811_v14 = vpop.xlane.xlu1 %5810 }
0x1b29   :  { %v5815_v11 = vmul.f32 0.03125, %v5811_v14 }
0x1b2a   :  { %v5818_v47 = vsub.f32 %v5804_v6, %v5816_v30 }
0x1b2b   :  { %v5817_v17 = vsub.f32 %v5803_v7, %v5815_v11 }
0x1b2c   :  { %v5820_v58 = vmul.f32 %v5818_v47, %v5818_v47 }
0x1b2d   :  { %v5819_v18 = vmul.f32 %v5817_v17, %v5817_v17 }
0x1b2e   :  { %v5824_v19 = vsel %vm57_vm0, %v5820_v58, 0.0 }
0x1b2f   :  { %5825 = vadd.xlane.f32.xlu0 %v5824_v19  ;;  %v5821_v53 = vsel %vm57_vm0, %v5819_v18, 0.0 }
0x1b30   :  { %5822 = vadd.xlane.f32.xlu1 %v5821_v53 }
0x1bbc   :  { %v5826_v20 = vpop.xlane.xlu0 %5825 }
0x1bbd   :  { %v5828_v21 = vmul.f32 0.03125, %v5826_v20  ;;  %v5823_v13 = vpop.xlane.xlu1 %5822 }
0x1bbe   :  { %v5827_v22 = vmul.f32 0.03125, %v5823_v13 }
0x1bbf   :  { %v5830_v23 = vadd.f32 1e-05, %v5828_v21 }
0x1bc0   :  { %v5829_v24 = vadd.f32 1e-05, %v5827_v22 }
0x1bc1   :  { %6624 = vrsqrt.f32 %v5830_v23 }
0x1bc2   :  { %6626 = vrsqrt.f32 %v5829_v24 }
0x1bcb   :  { %v6625_v25 = vpop.eup %6624 }
0x1bcc   :  { %v6627_v27 = vpop.eup %6626  ;;  %v5834_v28 = vmul.f32 %v6625_v25, %v5818_v47 }
0x1bcd   :  { %v5833_v29 = vmul.f32 %v6627_v27, %v5817_v17 }
0x1bce   :  { %v5842_v34 = vmul.f32 %v5988_v26, %v5834_v28 }
0x1bcf   :  { %v5841_v35 = vmul.f32 %v5988_v26, %v5833_v29 }
0x1bd0   :  { %v5850_v4 = vadd.f32 %v5989_v33, %v5842_v34 }
0x1bd1   :  { %v5849_v36 = vadd.f32 %v5989_v33, %v5841_v35 }
0x1bd2   :  { %5852 = vst.msk [vmem:[#allocation2 + $0x8] sm:$0xff] %vm57_vm0, %v5850_v4 }
0x1bd3   :  { %5851 = vst.msk [vmem:[#allocation2] sm:$0xff] %vm57_vm0, %v5849_v36 }
0x1bd4   :  { %6639 = shalt.err (!%p6636_p4)
}
0x1bd5   :  { %s6640_s16 = scalar_lea.hbm %s7475_s14, 256 }
0x1bd6   :  { %p6641_p5 = scmp.ne.s32.totalorder %s7475_s14, %s6640_s16  ;;  %p6644_p6 = scmp.lt.u32.totalorder %s6640_s16, %s7475_s14 }
0x1bd8   :  { %p6646_p7 = pnand %p6644_p6, %p6641_p5 }
0x1bda   :  { %6649 = shalt.err (!%p6646_p7)
}
0x1bdb   :  { %s6665_s2 = smov 128  }
0x1bdc   :  { %5864 = dma.vmem_to_hbm [thread:$0]  %s5859_s30, 256, %s7475_s14, [#allocation3], %s6665_s2, %s6665_s2, %s6663_s24  }
0x1bdd   :  { %6650 = dma.done.wait [#allocation3], 256  }
0x1bde   :  { %6651 = vsyncadd [#allocation3], 4294967040 }
0x1bdf   :  { %5868 = vsyncpa [#allocation3], 1 }

</bundles_post_ra>
